<compile_context>
chip_gen: v6e
topology: v6e:2x2x1
jax: 0.10.0
libtpu: 0.0.40
codegen_flags: <defaults>
</compile_context>

<pallas_src>
import jax
import jax.numpy as jnp
import numpy as np
from jax.experimental import pallas as pl
from jax.experimental.pallas import tpu as pltpu


IMG = 28                       # input spatial size (required for fc1.in_features == 720)
IN_FEATS = IMG * IMG           # 784
CONV_OUT = 5 * 12 * 12         # 720 (NCHW flatten of the conv output)
CONV_OUT_P = 768               # 720 zero-padded to a multiple of 128/256 lanes
HID = 100
HID_P = 128                    # 100 zero-padded to a full lane register
OUT = 10
MAX_BATCH_TILE = 512           # multiple of 128 (v5e MXU rows) and 256 (v6e/v7x)


def _round_up(x, m):
    return (x + m - 1) // m * m


# ------------------------------ Pallas kernel ------------------------------ #

def fused_forward_kernel(x_ref, wc_ref, bc_ref, w1_ref, b1_ref, w2_ref, b2_ref,
                         o_ref):
    """conv (as dense matmul) + relu + fc1 + relu + fc2 for one batch tile.

    x_ref : (TB, 784)   bf16  flattened images
    wc_ref: (784, 768)  bf16  dense-equivalent conv1 weights (zero-padded cols)
    bc_ref: (1, 768)    f32   conv bias broadcast over the flattened conv output
    w1_ref: (768, 128)  bf16  fc1 weight (in, out), zero-padded rows/cols
    b1_ref: (1, 128)    f32
    w2_ref: (128, 10)   bf16  fc2 weight (in, out), zero-padded rows
    b2_ref: (1, 10)     f32
    o_ref : (TB, 10)    f32
    """
    conv = jnp.dot(x_ref[...], wc_ref[...], preferred_element_type=jnp.float32)
    conv = jnp.maximum(conv + bc_ref[...], 0.0)
    h = jnp.dot(conv.astype(jnp.bfloat16), w1_ref[...],
                preferred_element_type=jnp.float32)
    h = jnp.maximum(h + b1_ref[...], 0.0)
    o_ref[...] = (jnp.dot(h.astype(jnp.bfloat16), w2_ref[...],
                          preferred_element_type=jnp.float32)
                  + b2_ref[...])


# ------------------------------ Pallas wrapper ----------------------------- #

def crypto_net_forward(x, kernel_params):
    """x: (N, 1, 28, 28) -> (N, 10) f32; all compute in one pallas_call."""
    wc, bc, w1, b1, w2, b2 = kernel_params
    n = x.shape[0]
    # Free relabel (C == 1); bf16 feed halves the only large DMA stream.
    xf = x.reshape(n, IN_FEATS).astype(jnp.bfloat16)

    tb = min(MAX_BATCH_TILE, _round_up(max(n, 1), 8))
    grid = (pl.cdiv(n, tb),)          # boundary block clipped by Pallas, no host pad

    resident = pl.BlockSpec(memory_space=pltpu.MemorySpace.VMEM)  # single-buffered
    out = pl.pallas_call(
        fused_forward_kernel,
        out_shape=jax.ShapeDtypeStruct((n, OUT), jnp.float32),
        grid=grid,
        in_specs=[
            pl.BlockSpec((tb, IN_FEATS), lambda i: (i, 0)),   # batch-tiled x
            resident,                                         # wc
            resident,                                         # bc
            resident,                                         # w1
            resident,                                         # b1
            resident,                                         # w2
            resident,                                         # b2
        ],
        out_specs=pl.BlockSpec((tb, OUT), lambda i: (i, 0)),
        compiler_params=pltpu.CompilerParams(
            dimension_semantics=("parallel",)),
    )(xf, wc, bc, w1, b1, w2, b2)
    return out


# --------------------- One-time parameter preprocessing --------------------- #

def conv1_as_dense(conv_w):
    """Lower conv1 (5x5, stride 2, VALID, 1->5 ch) on a 28x28 image to (784, 768).

    dense[h*28 + w, c*144 + oh*12 + ow] = conv_w[c, 0, h - 2*oh, w - 2*ow]
    whenever the kernel offsets are in range, else 0.  Columns 720..767 are
    zero padding.  Input-independent, host-side preprocessing done once.
    """
    w = np.asarray(conv_w, np.float32)                       # (5, 1, 5, 5)
    dense = np.zeros((IN_FEATS, CONV_OUT_P), np.float32)
    for c in range(5):
        for oh in range(12):
            for ow in range(12):
                img = np.zeros((IMG, IMG), np.float32)
                img[2 * oh:2 * oh + 5, 2 * ow:2 * ow + 5] = w[c, 0]
                dense[:, c * 144 + oh * 12 + ow] = img.reshape(-1)
    return jnp.asarray(dense).astype(jnp.bfloat16)


def prepare_kernel_params(params):
    conv_w, conv_b, fc1_w, fc1_b, fc2_w, fc2_b = params
    wc = conv1_as_dense(conv_w)                              # (784, 768) bf16
    bc = jnp.zeros((1, CONV_OUT_P), jnp.float32).at[0, :CONV_OUT].set(
        jnp.repeat(conv_b.astype(jnp.float32), 144))
    w1 = jnp.zeros((CONV_OUT_P, HID_P), jnp.bfloat16).at[:CONV_OUT, :HID].set(
        fc1_w.T.astype(jnp.bfloat16))                        # (768, 128) bf16
    b1 = jnp.zeros((1, HID_P), jnp.float32).at[0, :HID].set(
        fc1_b.astype(jnp.float32))
    w2 = jnp.zeros((HID_P, OUT), jnp.bfloat16).at[:HID, :].set(
        fc2_w.T.astype(jnp.bfloat16))                        # (128, 10) bf16
    b2 = fc2_b.reshape(1, OUT).astype(jnp.float32)
    return (wc, bc, w1, b1, w2, b2)


# --------------------------- Parameters & reference ------------------------- #

def init_params(key):
    # PyTorch-style uniform(-1/sqrt(fan_in), 1/sqrt(fan_in)), deterministic.
    ks = jax.random.split(key, 6)

    def u(k, shape, fan_in):
        lim = 1.0 / np.sqrt(fan_in)
        return jax.random.uniform(k, shape, jnp.float32, -lim, lim)

    conv_w = u(ks[0], (5, 1, 5, 5), 25)
    conv_b = u(ks[1], (5,), 25)
    fc1_w = u(ks[2], (100, 720), 720)
    fc1_b = u(ks[3], (100,), 720)
    fc2_w = u(ks[4], (10, 100), 100)
    fc2_b = u(ks[5], (10,), 100)
    return (conv_w, conv_b, fc1_w, fc1_b, fc2_w, fc2_b)


def reference_forward(x, params):
    """Pure-JAX reference with the same precision recipe as the kernel
    (bf16 matmul inputs, f32 accumulation, f32 biases)."""
    conv_w, conv_b, fc1_w, fc1_b, fc2_w, fc2_b = params
    y = jax.lax.conv_general_dilated(
        x.astype(jnp.bfloat16), conv_w.astype(jnp.bfloat16),
        window_strides=(2, 2), padding="VALID",
        dimension_numbers=("NCHW", "OIHW", "NCHW"),
        preferred_element_type=jnp.float32)
    y = jnp.maximum(y + conv_b.reshape(1, 5, 1, 1).astype(jnp.float32), 0.0)
    y = y.reshape(x.shape[0], CONV_OUT)
    h = jnp.dot(y.astype(jnp.bfloat16), fc1_w.T.astype(jnp.bfloat16),
                preferred_element_type=jnp.float32) + fc1_b.astype(jnp.float32)
    h = jnp.maximum(h, 0.0)
    return (jnp.dot(h.astype(jnp.bfloat16), fc2_w.T.astype(jnp.bfloat16),
                    preferred_element_type=jnp.float32)
            + fc2_b.astype(jnp.float32))


# ---------------------------------- Main ------------------------------------ #

if __name__ == "__main__":
    key = jax.random.PRNGKey(0)
    kp, kx, kx2 = jax.random.split(key, 3)
    params = init_params(kp)
    kparams = prepare_kernel_params(params)

    # Small demo batch (28x28 is required for fc1.in_features == 720).
    x = jax.random.normal(kx, (2, 1, IMG, IMG), dtype=jnp.float32)
    out = jax.block_until_ready(crypto_net_forward(x, kparams))
    ref = jax.block_until_ready(reference_forward(x, params))
    np.testing.assert_allclose(np.asarray(out), np.asarray(ref),
                               rtol=5e-3, atol=5e-3)
    assert out.shape == (2, 10) and out.dtype == jnp.float32

    # Exercise the multi-step grid with a clipped boundary block (600 = 512 + 88).
    xb = jax.random.normal(kx2, (600, 1, IMG, IMG), dtype=jnp.float32)
    outb = jax.block_until_ready(crypto_net_forward(xb, kparams))
    refb = jax.block_until_ready(reference_forward(xb, params))
    np.testing.assert_allclose(np.asarray(outb), np.asarray(refb),
                               rtol=5e-3, atol=5e-3)

    print("KERNEL_OK")
</pallas_src>

<mosaic_0001>
module attributes {stable_mosaic.version = 11 : i64} {
  func.func @fused_forward_kernel(%arg0: i32, %arg1: memref<8x784xbf16, #tpu.memory_space<vmem>>, %arg2: memref<784x768xbf16, #tpu.memory_space<vmem>>, %arg3: memref<1x768xf32, #tpu.memory_space<vmem>>, %arg4: memref<768x128xbf16, #tpu.memory_space<vmem>>, %arg5: memref<1x128xf32, #tpu.memory_space<vmem>>, %arg6: memref<128x10xbf16, #tpu.memory_space<vmem>>, %arg7: memref<1x10xf32, #tpu.memory_space<vmem>>, %arg8: memref<8x10xf32, #tpu.memory_space<vmem>>) attributes {dimension_semantics = [#tpu.dimension_semantics<parallel>], iteration_bounds = array<i64: 1>, scalar_prefetch = 0 : i64, scratch_operands = 0 : i64, tpu.core_type = #tpu.core_type<tc>, window_params = [{transform_indices = @transform_0, window_bounds = array<i64: 8, 784>}, {pipeline_mode = #tpu.pipeline_mode<synchronous>, transform_indices = @transform_1, window_bounds = array<i64: 784, 768>}, {pipeline_mode = #tpu.pipeline_mode<synchronous>, transform_indices = @transform_2, window_bounds = array<i64: 1, 768>}, {pipeline_mode = #tpu.pipeline_mode<synchronous>, transform_indices = @transform_3, window_bounds = array<i64: 768, 128>}, {pipeline_mode = #tpu.pipeline_mode<synchronous>, transform_indices = @transform_4, window_bounds = array<i64: 1, 128>}, {pipeline_mode = #tpu.pipeline_mode<synchronous>, transform_indices = @transform_5, window_bounds = array<i64: 128, 10>}, {pipeline_mode = #tpu.pipeline_mode<synchronous>, transform_indices = @transform_6, window_bounds = array<i64: 1, 10>}, {transform_indices = @transform_7, window_bounds = array<i64: 8, 10>}]} {
    %c0 = arith.constant 0 : index
    %c0_0 = arith.constant 0 : index
    %0 = vector.load %arg1[%c0, %c0_0] : memref<8x784xbf16, #tpu.memory_space<vmem>>, vector<8x784xbf16>
    %c0_1 = arith.constant 0 : index
    %c0_2 = arith.constant 0 : index
    %1 = vector.load %arg2[%c0_1, %c0_2] : memref<784x768xbf16, #tpu.memory_space<vmem>>, vector<784x768xbf16>
    %cst = arith.constant dense<0.000000e+00> : vector<8x768xf32>
    %2 = tpu.matmul %0, %1, %cst {dimension_numbers = #tpu.dot_dimension_numbers<[1], [0], [0], [1], [0, 0, 1, 1], [], []>} : vector<8x784xbf16>, vector<784x768xbf16>, vector<8x768xf32> -> vector<8x768xf32>
    %c0_3 = arith.constant 0 : index
    %c0_4 = arith.constant 0 : index
    %3 = vector.load %arg3[%c0_3, %c0_4] : memref<1x768xf32, #tpu.memory_space<vmem>>, vector<1x768xf32>
    %4 = vector.broadcast %3 : vector<1x768xf32> to vector<8x768xf32>
    %5 = arith.addf %2, %4 : vector<8x768xf32>
    %cst_5 = arith.constant 0.000000e+00 : f32
    %6 = vector.broadcast %cst_5 : f32 to vector<8x768xf32>
    %7 = arith.maximumf %5, %6 : vector<8x768xf32>
    %8 = arith.truncf %7 : vector<8x768xf32> to vector<8x768xbf16>
    %c0_6 = arith.constant 0 : index
    %c0_7 = arith.constant 0 : index
    %9 = vector.load %arg4[%c0_6, %c0_7] : memref<768x128xbf16, #tpu.memory_space<vmem>>, vector<768x128xbf16>
    %cst_8 = arith.constant dense<0.000000e+00> : vector<8x128xf32>
    %10 = tpu.matmul %8, %9, %cst_8 {dimension_numbers = #tpu.dot_dimension_numbers<[1], [0], [0], [1], [0, 0, 1, 1], [], []>} : vector<8x768xbf16>, vector<768x128xbf16>, vector<8x128xf32> -> vector<8x128xf32>
    %c0_9 = arith.constant 0 : index
    %c0_10 = arith.constant 0 : index
    %11 = vector.load %arg5[%c0_9, %c0_10] : memref<1x128xf32, #tpu.memory_space<vmem>>, vector<1x128xf32>
    %12 = vector.broadcast %11 : vector<1x128xf32> to vector<8x128xf32>
    %13 = arith.addf %10, %12 : vector<8x128xf32>
    %cst_11 = arith.constant 0.000000e+00 : f32
    %14 = vector.broadcast %cst_11 : f32 to vector<8x128xf32>
    %15 = arith.maximumf %13, %14 : vector<8x128xf32>
    %16 = arith.truncf %15 : vector<8x128xf32> to vector<8x128xbf16>
    %c0_12 = arith.constant 0 : index
    %c0_13 = arith.constant 0 : index
    %17 = vector.load %arg6[%c0_12, %c0_13] : memref<128x10xbf16, #tpu.memory_space<vmem>>, vector<128x10xbf16>
    %cst_14 = arith.constant dense<0.000000e+00> : vector<8x10xf32>
    %18 = tpu.matmul %16, %17, %cst_14 {dimension_numbers = #tpu.dot_dimension_numbers<[1], [0], [0], [1], [0, 0, 1, 1], [], []>} : vector<8x128xbf16>, vector<128x10xbf16>, vector<8x10xf32> -> vector<8x10xf32>
    %c0_15 = arith.constant 0 : index
    %c0_16 = arith.constant 0 : index
    %19 = vector.load %arg7[%c0_15, %c0_16] : memref<1x10xf32, #tpu.memory_space<vmem>>, vector<1x10xf32>
    %20 = vector.broadcast %19 : vector<1x10xf32> to vector<8x10xf32>
    %21 = arith.addf %18, %20 : vector<8x10xf32>
    %c0_17 = arith.constant 0 : index
    %c0_18 = arith.constant 0 : index
    %22 = vector.load %arg8[%c0_17, %c0_18] : memref<8x10xf32, #tpu.memory_space<vmem>>, vector<8x10xf32>
    tpu.vector_store %arg8[%c0_17, %c0_18], %21 {strides = array<i32>} : memref<8x10xf32, #tpu.memory_space<vmem>>, vector<8x10xf32>,
    return
  }
  func.func @transform_0(%arg0: i32) -> (i32, i32) {
    %c0_i32 = arith.constant 0 : i32
    %c0_i32_0 = arith.constant 0 : i32
    return %arg0, %c0_i32 : i32, i32
  }
  func.func @transform_1(%arg0: i32) -> (i32, i32) {
    %c0_i32 = arith.constant 0 : i32
    %c0_i32_0 = arith.constant 0 : i32
    %c0_i32_1 = arith.constant 0 : i32
    return %c0_i32, %c0_i32_0 : i32, i32
  }
  func.func @transform_2(%arg0: i32) -> (i32, i32) {
    %c0_i32 = arith.constant 0 : i32
    %c0_i32_0 = arith.constant 0 : i32
    %c0_i32_1 = arith.constant 0 : i32
    return %c0_i32, %c0_i32_0 : i32, i32
  }
  func.func @transform_3(%arg0: i32) -> (i32, i32) {
    %c0_i32 = arith.constant 0 : i32
    %c0_i32_0 = arith.constant 0 : i32
    %c0_i32_1 = arith.constant 0 : i32
    return %c0_i32, %c0_i32_0 : i32, i32
  }
  func.func @transform_4(%arg0: i32) -> (i32, i32) {
    %c0_i32 = arith.constant 0 : i32
    %c0_i32_0 = arith.constant 0 : i32
    %c0_i32_1 = arith.constant 0 : i32
    return %c0_i32, %c0_i32_0 : i32, i32
  }
  func.func @transform_5(%arg0: i32) -> (i32, i32) {
    %c0_i32 = arith.constant 0 : i32
    %c0_i32_0 = arith.constant 0 : i32
    %c0_i32_1 = arith.constant 0 : i32
    return %c0_i32, %c0_i32_0 : i32, i32
  }
  func.func @transform_6(%arg0: i32) -> (i32, i32) {
    %c0_i32 = arith.constant 0 : i32
    %c0_i32_0 = arith.constant 0 : i32
    %c0_i32_1 = arith.constant 0 : i32
    return %c0_i32, %c0_i32_0 : i32, i32
  }
  func.func @transform_7(%arg0: i32) -> (i32, i32) {
    %c0_i32 = arith.constant 0 : i32
    %c0_i32_0 = arith.constant 0 : i32
    return %arg0, %c0_i32 : i32, i32
  }
}

</mosaic_0001>

<bundles_post_ra>
// kernel: tpu_custom_call.1
= control target key start
LH: loop header
LB: loop body
LE: loop exit
PB: predicated region body
PF: predicated region fallthrough
CT: control target
= control target key end

     0   :  { %12 = vsyncpa [#allocation3], 0  ;;  %s4456_s0 = inlined_call_operand.hbm [shape: bf16[2,784], index: 0, kind: input, shape index: {}]   ;;  %s4457_s1 = inlined_call_operand.hbm [shape: bf16[784,768], index: 1, kind: input, shape index: {}]   ;;  %s4458_s2 = inlined_call_operand.hbm [shape: f32[1,768], index: 2, kind: input, shape index: {}]   ;;  %s4459_s3 = inlined_call_operand.hbm [shape: bf16[768,128], index: 3, kind: input, shape index: {}]   ;;  %s4460_s4 = inlined_call_operand.hbm [shape: f32[1,128], index: 4, kind: input, shape index: {}]   ;;  %s4461_s5 = inlined_call_operand.vmem [shape: bf16[128,10], index: 5, kind: input, shape index: {}]   ;;  %s4462_s6 = inlined_call_operand.hbm [shape: f32[1,10], index: 6, kind: input, shape index: {}]   ;;  %s4463_s7 = inlined_call_operand.hbm [shape: f32[2,10], index: 7, kind: output, shape index: {}]  }
   0x1   :  { %13 = vsyncpa [#allocation6], 0 }
   0x2   :  { %14 = vsyncpa [#allocation9], 0 }
   0x3   :  { %15 = vsyncpa [#allocation12], 0 }
   0x4   :  { %16 = vsyncpa [#allocation4], 0 }
   0x5   :  { %21 = vsyncadd [#allocation3], 336  ;;  %s4257_s24 = smov [#allocation5]  }
   0x6   :  { %s34_s25 = sshll.u32 %s4257_s24, 4  ;;  %s35_s25 = int_to_ptr.vmem [resolvable:$true] %s34_s25 }
   0x7   :  { %s4115_s26 = scalar_lea.vmem %s35_s25, 37632  ;;  %p4120_p1 = scmp.lt.s32.totalorder %s35_s25, %s35_s25 }
   0x8   :  { %p4116_p0 = scmp.ne.s32.totalorder %s35_s25, %s4115_s26  ;;  %p4121_p2 = scmp.lt.s32.totalorder %s4115_s26, %s4115_s26 }
   0xa   :  { %p4122_p3 = por %p4121_p2, %p4120_p1 }
   0xc   :  { %p4123_p4 = pnand %p4122_p3, %p4116_p0 }
   0xe   :  { %4126 = shalt.err (!%p4123_p4)
}
   0xf   :  { %s4258_s27 = smov 384   ;;  %s4259_s28 = smov 24  }
  0x10   :  { %40 = dma.hbm_to_vmem [thread:$0]  %s4457_s1, 37632, %s35_s25, [#allocation6], %s4258_s27, %s4258_s27, %s4259_s28  }
  0x11   :  { %s4260_s8 = smov [#allocation8]  }
  0x12   :  { %s56_s9 = sshll.u32 %s4260_s8, 4  ;;  %s57_s9 = int_to_ptr.vmem [resolvable:$true] %s56_s9 }
  0x13   :  { %s4135_s10 = scalar_lea.vmem %s57_s9, 6144  ;;  %p4140_p6 = scmp.lt.s32.totalorder %s57_s9, %s57_s9 }
  0x14   :  { %p4136_p5 = scmp.ne.s32.totalorder %s57_s9, %s4135_s10  ;;  %p4141_p7 = scmp.lt.s32.totalorder %s4135_s10, %s4135_s10 }
  0x16   :  { %p4142_p8 = por %p4141_p7, %p4140_p6 }
  0x18   :  { %p4143_p9 = pnand %p4142_p8, %p4136_p5 }
  0x1a   :  { %4146 = shalt.err (!%p4143_p9)
}
  0x1b   :  { %s4261_s11 = smov 64   ;;  %s4262_s12 = smov 4  }
  0x1c   :  { %62 = dma.hbm_to_vmem [thread:$0]  %s4459_s3, 6144, %s57_s9, [#allocation9], %s4261_s11, %s4261_s11, %s4262_s12  }
  0x1d   :  { %s4263_s15 = smov [#allocation2]  }
  0x1e   :  { %s22_s16 = sshll.u32 %s4263_s15, 4  ;;  %s23_s16 = int_to_ptr.vmem [resolvable:$true] %s22_s16 }
  0x1f   :  { %s4155_s1 = scalar_lea.vmem %s23_s16, 112  ;;  %s4159_s17 = scalar_lea.vmem %s23_s16, 448 }
  0x20   :  { %p4156_p10 = scmp.ne.s32.totalorder %s23_s16, %s4155_s1  ;;  %p4160_p11 = scmp.lt.s32.totalorder %s23_s16, %s23_s16 }
  0x21   :  { %p4161_p12 = scmp.lt.s32.totalorder %s4159_s17, %s4155_s1 }
  0x23   :  { %p4162_p13 = por %p4161_p12, %p4160_p11 }
  0x25   :  { %p4163_p0 = pnand %p4162_p13, %p4156_p10 }
  0x27   :  { %4166 = shalt.err (!%p4163_p0)
}
  0x28   :  { %s4264_s18 = smov 112   ;;  %s4265_s19 = smov 7  }
  0x29   :  { %28 = dma.hbm_to_vmem [thread:$0]  %s4456_s0, 112, %s23_s16, [#allocation3], %s4264_s18, %s4264_s18, %s4265_s19  }
  0x2a   :  { %s4266_s22 = smov [#allocation7]   ;;  %s4267_s3 = smov [#allocation10]  }
  0x2b   :  { %s47_s23 = sshll.u32 %s4266_s22, 4  ;;  %s69_s24 = sshll.u32 %s4267_s3, 4  ;;  %s48_s23 = int_to_ptr.vmem [resolvable:$true] %s47_s23  ;;  %s70_s24 = int_to_ptr.vmem [resolvable:$true] %s69_s24 }
  0x2c   :  { %s4175_s25 = scalar_lea.vmem %s48_s23, 96  ;;  %p4180_p2 = scmp.lt.s32.totalorder %s48_s23, %s48_s23 }
  0x2d   :  { %p4176_p1 = scmp.ne.s32.totalorder %s48_s23, %s4175_s25  ;;  %p4181_p3 = scmp.lt.s32.totalorder %s4175_s25, %s4175_s25 }
  0x2f   :  { %p4182_p4 = por %p4181_p3, %p4180_p2 }
  0x31   :  { %p4183_p5 = pnand %p4182_p4, %p4176_p1 }
  0x33   :  { %4186 = shalt.err (!%p4183_p5)
}
  0x34   :  { %50 = dma.hbm_to_vmem [thread:$0]  %s4458_s2, 96, %s48_s23, [#allocation6]  }
  0x35   :  { %s4195_s28 = scalar_lea.vmem %s70_s24, 16  ;;  %s4199_s0 = scalar_lea.vmem %s70_s24, 32 }
  0x36   :  { %p4196_p6 = scmp.ne.s32.totalorder %s70_s24, %s4195_s28  ;;  %p4200_p7 = scmp.lt.s32.totalorder %s70_s24, %s70_s24 }
  0x37   :  { %p4201_p8 = scmp.lt.s32.totalorder %s4199_s0, %s4195_s28 }
  0x39   :  { %p4202_p9 = por %p4201_p8, %p4200_p7 }
  0x3b   :  { %p4203_p10 = pnand %p4202_p9, %p4196_p6 }
  0x3d   :  { %4206 = shalt.err (!%p4203_p10)
}
  0x3e   :  { %72 = dma.hbm_to_vmem [thread:$0]  %s4460_s4, 16, %s70_s24, [#allocation9]  }
  0x3f   :  { %s4268_s8 = smov [#allocation11]  }
  0x40   :  { %s81_s9 = sshll.u32 %s4268_s8, 4  ;;  %s82_s9 = int_to_ptr.vmem [resolvable:$true] %s81_s9 }
  0x41   :  { %s4215_s10 = scalar_lea.vmem %s82_s9, 16  ;;  %s4219_s11 = scalar_lea.vmem %s82_s9, 32 }
  0x42   :  { %p4216_p11 = scmp.ne.s32.totalorder %s82_s9, %s4215_s10  ;;  %p4220_p12 = scmp.lt.s32.totalorder %s82_s9, %s82_s9 }
  0x43   :  { %p4221_p13 = scmp.lt.s32.totalorder %s4219_s11, %s4215_s10 }
  0x45   :  { %p4222_p0 = por %p4221_p13, %p4220_p12 }
  0x47   :  { %p4223_p1 = pnand %p4222_p0, %p4216_p11 }
  0x49   :  { %4226 = shalt.err (!%p4223_p1)
}
  0x4a   :  { %84 = dma.hbm_to_vmem [thread:$0]  %s4462_s6, 16, %s82_s9, [#allocation12]  }
  0x4b   :  { %4247 = dma.done.wait [#allocation3], 448  }
  0x4c   :  { %4248 = vsyncadd [#allocation3], 4294966848 }
  0x4d   :  { %4249 = dma.done.wait [#allocation6], 37728  }
  0x4e   :  { %4250 = vsyncadd [#allocation6], 4294929568 }
  0x4f   :  { %4251 = dma.done.wait [#allocation9], 6160  }
  0x50   :  { %4252 = vsyncadd [#allocation9], 4294961136 }
  0x51   :  { %4253 = dma.done.wait [#allocation12], 16  }
  0x52   :  { %4254 = vsyncadd [#allocation12], 4294967280  ;;  %v3604_v0 = vld [vmem:[#allocation5 + $0x154] ss:$24 sps:$4 sm:$0xff]   ;;  %v3608_v2 = vld [vmem:[#allocation5 + $0x150] ss:$24 sps:$4 sm:$0xff]   ;;  %v404_v38 = vlaneseq }
  0x53   :  { %v3606_v1 = vld [vmem:[#allocation5 + $0x454] ss:$24 sps:$4 sm:$0xff]   ;;  %1985 = vmatprep.subr.bf16.mxu0 %v3604_v0  ;;  %v3609_v3 = vld [vmem:[#allocation5 + $0x450] ss:$24 sps:$4 sm:$0xff]   ;;  %v3610_v4 = vld [vmem:[#allocation5 + $0x124] ss:$24 sps:$4 sm:$0xff]  }
  0x54   :  { %2026 = vmatprep.subr.bf16.mxu1 %v3606_v1  ;;  %1986 = vmatpush1.bf16.msra.mxu0 %v3608_v2  ;;  %v3612_v5 = vld [vmem:[#allocation5 + $0x424] ss:$24 sps:$4 sm:$0xff]   ;;  %v3614_v6 = vld [vmem:[#allocation5 + $0x120] ss:$24 sps:$4 sm:$0xff]   ;;  %v3616_v8 = vld [vmem:[#allocation5 + $0xf4] ss:$24 sps:$4 sm:$0xff]  }
  0x55   :  { %2027 = vmatpush1.bf16.msra.mxu1 %v3609_v3  ;;  %1987 = vmatprep.subr.bf16.mxu0 %v3610_v4  ;;  %v3615_v7 = vld [vmem:[#allocation5 + $0x420] ss:$24 sps:$4 sm:$0xff]   ;;  %v3618_v9 = vld [vmem:[#allocation5 + $0x3f4] ss:$24 sps:$4 sm:$0xff]   ;;  %v3620_v10 = vld [vmem:[#allocation5 + $0xf0] ss:$24 sps:$4 sm:$0xff]  }
  0x56   :  { %2028 = vmatprep.subr.bf16.mxu1 %v3612_v5  ;;  %v3621_v11 = vld [vmem:[#allocation5 + $0x3f0] ss:$24 sps:$4 sm:$0xff]   ;;  %v3622_v12 = vld [vmem:[#allocation5 + $0xc4] ss:$24 sps:$4 sm:$0xff]   ;;  %v3626_v14 = vld [vmem:[#allocation5 + $0xc0] ss:$24 sps:$4 sm:$0xff]  }
  0x57   :  { %v3624_v13 = vld [vmem:[#allocation5 + $0x3c4] ss:$24 sps:$4 sm:$0xff]   ;;  %v3627_v15 = vld [vmem:[#allocation5 + $0x3c0] ss:$24 sps:$4 sm:$0xff]   ;;  %v3628_v16 = vld [vmem:[#allocation5 + $0x94] ss:$24 sps:$4 sm:$0xff]  }
  0x58   :  { %1988 = vmatpush1.bf16.msra.mxu0 %v3614_v6  ;;  %v3630_v17 = vld [vmem:[#allocation5 + $0x394] ss:$24 sps:$4 sm:$0xff]   ;;  %v3632_v18 = vld [vmem:[#allocation5 + $0x90] ss:$24 sps:$4 sm:$0xff]   ;;  %v3634_v20 = vld [vmem:[#allocation5 + $0x64] ss:$24 sps:$4 sm:$0xff]  }
  0x59   :  { %2029 = vmatpush1.bf16.msra.mxu1 %v3615_v7  ;;  %1989 = vmatprep.subr.bf16.mxu0 %v3616_v8  ;;  %v3633_v19 = vld [vmem:[#allocation5 + $0x390] ss:$24 sps:$4 sm:$0xff]   ;;  %v3636_v21 = vld [vmem:[#allocation5 + $0x364] ss:$24 sps:$4 sm:$0xff]   ;;  %v3638_v22 = vld [vmem:[#allocation5 + $0x60] ss:$24 sps:$4 sm:$0xff]  }
  0x5a   :  { %2030 = vmatprep.subr.bf16.mxu1 %v3618_v9  ;;  %v3639_v23 = vld [vmem:[#allocation5 + $0x360] ss:$24 sps:$4 sm:$0xff]   ;;  %v3640_v24 = vld [vmem:[#allocation5 + $0x34] ss:$24 sps:$4 sm:$0xff]   ;;  %v3644_v26 = vld [vmem:[#allocation5 + $0x30] ss:$24 sps:$4 sm:$0xff]  }
  0x5b   :  { %v3642_v25 = vld [vmem:[#allocation5 + $0x334] ss:$24 sps:$4 sm:$0xff]   ;;  %v3645_v27 = vld [vmem:[#allocation5 + $0x330] ss:$24 sps:$4 sm:$0xff]   ;;  %v3646_v28 = vld [vmem:[#allocation5 + $0x4] ss:$24 sps:$4 sm:$0xff]  }
  0x5c   :  { %1990 = vmatpush1.bf16.msra.mxu0 %v3620_v10  ;;  %v3648_v29 = vld [vmem:[#allocation5 + $0x304] ss:$24 sps:$4 sm:$0xff]   ;;  %v3650_v30 = vld [vmem:[#allocation5] ss:$24 sps:$4 sm:$0xff]   ;;  %v3652_v32 = vld [vmem:[#allocation5 + $0x2d4] ss:$24 sps:$4 sm:$0xff]  }
  0x5d   :  { %2031 = vmatpush1.bf16.msra.mxu1 %v3621_v11  ;;  %1991 = vmatprep.subr.bf16.mxu0 %v3622_v12  ;;  %v3651_v31 = vld [vmem:[#allocation5 + $0x300] ss:$24 sps:$4 sm:$0xff]   ;;  %v3654_v33 = vld [vmem:[#allocation5 + $0x5d4] ss:$24 sps:$4 sm:$0xff]   ;;  %v3656_v34 = vld [vmem:[#allocation5 + $0x2d0] ss:$24 sps:$4 sm:$0xff]  }
  0x5e   :  { %2032 = vmatprep.subr.bf16.mxu1 %v3624_v13  ;;  %v3657_v35 = vld [vmem:[#allocation5 + $0x5d0] ss:$24 sps:$4 sm:$0xff]   ;;  %v3658_v36 = vld [vmem:[#allocation5 + $0x2a4] ss:$24 sps:$4 sm:$0xff]   ;;  %v4269_v39 = vmov 1966171168  }
  0x5f   :  { %v3660_v37 = vld [vmem:[#allocation5 + $0x5a4] ss:$24 sps:$4 sm:$0xff]   ;;  %v443_v40 = vunpack.c.l.s4 %v4269_v39  ;;  %v3662_v41 = vld [vmem:[#allocation5 + $0x2a0] ss:$24 sps:$4 sm:$0xff]   ;;  %v3664_v43 = vld [vmem:[#allocation5 + $0x274] ss:$24 sps:$4 sm:$0xff]  }
  0x60   :  { %1992 = vmatpush1.bf16.msra.mxu0 %v3626_v14  ;;  %v3663_v42 = vld [vmem:[#allocation5 + $0x5a0] ss:$24 sps:$4 sm:$0xff]   ;;  %v3666_v44 = vld [vmem:[#allocation5 + $0x574] ss:$24 sps:$4 sm:$0xff]   ;;  %v4334_v45 = vshrl.u32 %v404_v38, 7  ;;  %vm1981_vm0 = vcmask 130048  }
  0x61   :  { %2033 = vmatpush1.bf16.msra.mxu1 %v3627_v15  ;;  %1993 = vmatprep.subr.bf16.mxu0 %v3628_v16  ;;  %v444_v46 = vunpack.c.0.s8 %v443_v40  ;;  %v3668_v47 = vld [vmem:[#allocation5 + $0x270] ss:$24 sps:$4 sm:$0xff]   ;;  %v3670_v49 = vld [vmem:[#allocation5 + $0x244] ss:$24 sps:$4 sm:$0xff]   ;;  %v3674_v51 = vld [vmem:[#allocation5 + $0x240] ss:$24 sps:$4 sm:$0xff]  }
  0x62   :  { %2034 = vmatprep.subr.bf16.mxu1 %v3630_v17  ;;  %v3669_v48 = vld [vmem:[#allocation5 + $0x570] ss:$24 sps:$4 sm:$0xff]   ;;  %v3672_v50 = vld [vmem:[#allocation5 + $0x544] ss:$24 sps:$4 sm:$0xff]   ;;  %v3675_v52 = vld [vmem:[#allocation5 + $0x540] ss:$24 sps:$4 sm:$0xff]  }
  0x63   :  { %v4337_v53 = vsub.s32 %v444_v46, %v4334_v45  ;;  %v3676_v54 = vld [vmem:[#allocation5 + $0x214] ss:$24 sps:$4 sm:$0xff]   ;;  %v3680_v59 = vld [vmem:[#allocation5 + $0x210] ss:$24 sps:$4 sm:$0xff]   ;;  %v3682_v62 = vld [vmem:[#allocation5 + $0x1e4] ss:$24 sps:$4 sm:$0xff]  }
  0x64   :  { %1994 = vmatpush1.bf16.msra.mxu0 %v3632_v18  ;;  %v3700_v55 = vld [vmem:[#allocation2] ss:$7 sps:$4 sm:$0xff]   ;;  %v3703_v57 = vld [vmem:[#allocation2 + $0xe] ss:$7 sps:$4 sm:$0xff]   ;;  %vm4272_vm1 = vmmov 0   ;;  %vm3113_vm2 = vcmask 80896  }
  0x65   :  { %2035 = vmatpush1.bf16.msra.mxu1 %v3633_v19  ;;  %1995 = vmatprep.subr.bf16.mxu0 %v3634_v20  ;;  %v3678_v56 = vld [vmem:[#allocation5 + $0x514] ss:$24 sps:$4 sm:$0xff]   ;;  %v448_v58 = vrot.slane %v3700_v55, %v4337_v53  ;;  %v3681_v60 = vld [vmem:[#allocation5 + $0x510] ss:$24 sps:$4 sm:$0xff]   ;;  %v462_v61 = vrot.slane %v3703_v57, %v4337_v53  ;;  %v3684_v63 = vld [vmem:[#allocation5 + $0x4e4] ss:$24 sps:$4 sm:$0xff]  }
  0x66   :  { %2036 = vmatprep.subr.bf16.mxu1 %v3636_v21  ;;  %v3686_v1 = vld [vmem:[#allocation5 + $0x1e0] ss:$24 sps:$4 sm:$0xff]   ;;  %v3688_v4 = vld [vmem:[#allocation5 + $0x1b4] ss:$24 sps:$4 sm:$0xff]   ;;  %v3692_v7 = vld [vmem:[#allocation5 + $0x1b0] ss:$24 sps:$4 sm:$0xff]  }
  0x67   :  { %v471_v0 = vcombine.high %v448_v58, %v462_v61  ;;  %v3687_v2 = vld [vmem:[#allocation5 + $0x4e0] ss:$24 sps:$4 sm:$0xff]   ;;  %v3690_v5 = vld [vmem:[#allocation5 + $0x4b4] ss:$24 sps:$4 sm:$0xff]   ;;  %v3693_v9 = vld [vmem:[#allocation5 + $0x4b0] ss:$24 sps:$4 sm:$0xff]   ;;  %v470_v11 = vcombine.low %v448_v58, %v462_v61 }
  0x68   :  { %1996 = vmatpush1.bf16.msra.mxu0 %v3638_v22  ;;  %v3702_v8 = vld [vmem:[#allocation2 + $0x4] ss:$7 sps:$4 sm:$0x77]   ;;  %v3705_v10 = vld [vmem:[#allocation2 + $0x12] ss:$7 sps:$4 sm:$0x77]  }
  0x69   :  { %2037 = vmatpush1.bf16.msra.mxu1 %v3639_v23  ;;  %1997 = vmatprep.subr.bf16.mxu0 %v3640_v24  ;;  %v4342_v3 = vrot.slane %v471_v0, %v4337_v53  ;;  %v3694_v12 = vld [vmem:[#allocation5 + $0x184] ss:$24 sps:$4 sm:$0xff]   ;;  %v3698_v14 = vld [vmem:[#allocation5 + $0x180] ss:$24 sps:$4 sm:$0xff]   ;;  %v455_v16 = vrot.slane %v3702_v8, %v4337_v53  ;;  %v469_v17 = vrot.slane %v3705_v10, %v4337_v53  ;;  %v3708_v19 = vld [vmem:[#allocation5 + $0x754] ss:$24 sps:$4 sm:$0xff]  }
  0x6a   :  { %2038 = vmatprep.subr.bf16.mxu1 %v3642_v25  ;;  %v3696_v13 = vld [vmem:[#allocation5 + $0x484] ss:$24 sps:$4 sm:$0xff]   ;;  %v3699_v15 = vld [vmem:[#allocation5 + $0x480] ss:$24 sps:$4 sm:$0xff]   ;;  %v4353_v18 = vrot.slane %v470_v11, %v4337_v53  ;;  %v3706_v24 = vld [vmem:[#allocation5 + $0x750] ss:$24 sps:$4 sm:$0xff]  }
  0x6b   :  { %v4346_v6 = vcombine.high %v4342_v3, %v4342_v3  ;;  %2017 = vmatprep.mubr.bf16.mxu0 %v4342_v3  ;;  %v3711_v20 = vld [vmem:[#allocation5 + $0x904] ss:$24 sps:$4 sm:$0xff]   ;;  %v473_v21 = vcombine.high %v455_v16, %v469_v17  ;;  %v472_v22 = vcombine.low %v455_v16, %v469_v17  ;;  %v3709_v25 = vld [vmem:[#allocation5 + $0x900] ss:$24 sps:$4 sm:$0xff]   ;;  %v3756_v58 = vld [vmem:[#allocation5 + $0x8d4] ss:$24 sps:$4 sm:$0xff]  }
  0x6c   :  { %1998 = vmatpush1.bf16.msra.mxu0 %v3644_v26  ;;  %v4357_v23 = vcombine.high %v4353_v18, %v4353_v18  ;;  %v3714_v26 = vld [vmem:[#allocation5 + $0x724] ss:$24 sps:$4 sm:$0xff]   ;;  %v3721_v38 = vld [vmem:[#allocation5 + $0x128] ss:$24 sps:$4 sm:$0xff]  }
  0x6d   :  { %2039 = vmatpush1.bf16.msra.mxu1 %v3645_v27  ;;  %1999 = vmatprep.subr.bf16.mxu0 %v3646_v28  ;;  %v3717_v27 = vld [vmem:[#allocation5 + $0x15c] ss:$24 sps:$4 sm:$0xff]   ;;  %v4360_v28 = vrot.slane %v473_v21, %v4337_v53  ;;  %v3724_v39 = vld [vmem:[#allocation5 + $0x6c0] ss:$24 sps:$4 sm:$0xff]   ;;  %v3759_v61 = vld [vmem:[#allocation5 + $0xc] ss:$24 sps:$4 sm:$0xff]  }
  0x6e   :  { %2040 = vmatprep.subr.bf16.mxu1 %v3648_v29  ;;  %2058 = vmatprep.mubr.bf16.mxu1 %v4346_v6  ;;  %v4365_v29 = vrot.slane %v472_v22, %v4337_v53  ;;  %v3729_v40 = vld [vmem:[#allocation5 + $0xfc] ss:$24 sps:$4 sm:$0xff]   ;;  %v3747_v53 = vld [vmem:[#allocation5 + $0x6c] ss:$24 sps:$4 sm:$0xff]   ;;  %v3745_v55 = vld [vmem:[#allocation5 + $0x68] ss:$24 sps:$4 sm:$0xff]  }
  0x6f   :  { %v3738_v46 = vld [vmem:[#allocation5 + $0x664] ss:$24 sps:$4 sm:$0xff]   ;;  %v3760_v0 = vld [vmem:[#allocation5 + $0x8a0] ss:$24 sps:$4 sm:$0xff]   ;;  %v3792_v21 = vld [vmem:[#allocation5 + $0x7b4] ss:$24 sps:$4 sm:$0xff]  }
  0x70   :  { %2000 = vmatpush1.bf16.msra.mxu0 %v3650_v30  ;;  %v3712_v30 = vld [vmem:[#allocation5 + $0x720] ss:$24 sps:$4 sm:$0xff]   ;;  %v3753_v57 = vld [vmem:[#allocation5 + $0x3c] ss:$24 sps:$4 sm:$0xff]  }
  0x71   :  { %2041 = vmatpush1.bf16.msra.mxu1 %v3651_v31  ;;  %2001 = vmatprep.subr.bf16.mxu0 %v3652_v32  ;;  %v4270_v31 = vmov 0   ;;  %v3720_v32 = vld [vmem:[#allocation5 + $0x6f4] ss:$24 sps:$4 sm:$0xff]   ;;  %v3774_v8 = vld [vmem:[#allocation5 + $0x844] ss:$24 sps:$4 sm:$0xff]  }
  0x72   :  { %2042 = vmatprep.subr.bf16.mxu1 %v3654_v33  ;;  %v3715_v33 = vld [vmem:[#allocation5 + $0x158] ss:$24 sps:$4 sm:$0xff]   ;;  %v3777_v11 = vld [vmem:[#allocation5 + $0x27c] ss:$24 sps:$4 sm:$0xff]   ;;  %v3781_v17 = vld [vmem:[#allocation5 + $0x248] ss:$24 sps:$4 sm:$0xff]  }
  0x73   :  { %v3772_v10 = vld [vmem:[#allocation5 + $0x840] ss:$24 sps:$4 sm:$0xff]   ;;  %v3786_v16 = vld [vmem:[#allocation5 + $0x7e4] ss:$24 sps:$4 sm:$0xff]  }
  0x74   :  { %2002 = vmatpush2.bf16.msra.mxu0 %v3656_v34  ;;  %v3718_v34 = vld [vmem:[#allocation5 + $0x6f0] ss:$24 sps:$4 sm:$0xff]  }
  0x75   :  { %2043 = vmatpush2.bf16.msra.mxu1 %v3657_v35  ;;  %2003 = vmatprep.subr.bf16.mxu0 %v3658_v36  ;;  %v4371_v35 = vcombine.high %v4365_v29, %v4365_v29  ;;  %v3723_v36 = vld [vmem:[#allocation5 + $0x12c] ss:$24 sps:$4 sm:$0xff]   ;;  %v3787_v22 = vld [vmem:[#allocation5 + $0x218] ss:$24 sps:$4 sm:$0xff]  }
  0x76   :  { %2044 = vmatprep.subr.bf16.mxu1 %v3660_v37  ;;  %v3726_v37 = vld [vmem:[#allocation5 + $0x6c4] ss:$24 sps:$4 sm:$0xff]  }
  0x78   :  { %2004 = vmatpush2.bf16.msra.mxu0 %v3662_v41  ;;  %v3732_v41 = vld [vmem:[#allocation5 + $0x694] ss:$24 sps:$4 sm:$0xff]  }
  0x79   :  { %2045 = vmatpush2.bf16.msra.mxu1 %v3663_v42  ;;  %2005 = vmatprep.subr.bf16.mxu0 %v3664_v43  ;;  %v3727_v42 = vld [vmem:[#allocation5 + $0xf8] ss:$24 sps:$4 sm:$0xff]  }
  0x7a   :  { %2046 = vmatprep.subr.bf16.mxu1 %v3666_v44  ;;  %v3730_v43 = vld [vmem:[#allocation5 + $0x690] ss:$24 sps:$4 sm:$0xff]   ;;  %v3735_v44 = vld [vmem:[#allocation5 + $0xcc] ss:$24 sps:$4 sm:$0xff]  }
  0x7c   :  { %2006 = vmatpush2.bf16.msra.mxu0 %v3668_v47  ;;  %v3733_v47 = vld [vmem:[#allocation5 + $0xc8] ss:$24 sps:$4 sm:$0xff]  }
  0x7d   :  { %2047 = vmatpush2.bf16.msra.mxu1 %v3669_v48  ;;  %2007 = vmatprep.subr.bf16.mxu0 %v3670_v49  ;;  %v3736_v48 = vld [vmem:[#allocation5 + $0x660] ss:$24 sps:$4 sm:$0xff]   ;;  %v3741_v49 = vld [vmem:[#allocation5 + $0x9c] ss:$24 sps:$4 sm:$0xff]  }
  0x7e   :  { %2048 = vmatprep.subr.bf16.mxu1 %v3672_v50  ;;  %v3744_v50 = vld [vmem:[#allocation5 + $0x634] ss:$24 sps:$4 sm:$0xff]  }
  0x80   :  { %2008 = vmatpush2.bf16.msra.mxu0 %v3674_v51  ;;  %v3739_v51 = vld [vmem:[#allocation5 + $0x98] ss:$24 sps:$4 sm:$0xff]  }
  0x81   :  { %2049 = vmatpush2.bf16.msra.mxu1 %v3675_v52  ;;  %2009 = vmatprep.subr.bf16.mxu0 %v3676_v54  ;;  %v3742_v52 = vld [vmem:[#allocation5 + $0x630] ss:$24 sps:$4 sm:$0xff]   ;;  %v3750_v54 = vld [vmem:[#allocation5 + $0x604] ss:$24 sps:$4 sm:$0xff]  }
  0x82   :  { %2050 = vmatprep.subr.bf16.mxu1 %v3678_v56  ;;  %v3748_v56 = vld [vmem:[#allocation5 + $0x600] ss:$24 sps:$4 sm:$0xff]  }
  0x84   :  { %2010 = vmatpush2.bf16.msra.mxu0 %v3680_v59  ;;  %v3751_v59 = vld [vmem:[#allocation5 + $0x38] ss:$24 sps:$4 sm:$0xff]  }
  0x85   :  { %2051 = vmatpush2.bf16.msra.mxu1 %v3681_v60  ;;  %2011 = vmatprep.subr.bf16.mxu0 %v3682_v62  ;;  %v3754_v60 = vld [vmem:[#allocation5 + $0x8d0] ss:$24 sps:$4 sm:$0xff]   ;;  %v3762_v62 = vld [vmem:[#allocation5 + $0x8a4] ss:$24 sps:$4 sm:$0xff]  }
  0x86   :  { %2052 = vmatprep.subr.bf16.mxu1 %v3684_v63  ;;  %v3757_v63 = vld [vmem:[#allocation5 + $0x8] ss:$24 sps:$4 sm:$0xff]  }
  0x88   :  { %2012 = vmatpush2.bf16.msra.mxu0 %v3686_v1  ;;  %v3765_v1 = vld [vmem:[#allocation5 + $0x2dc] ss:$24 sps:$4 sm:$0xff]  }
  0x89   :  { %2053 = vmatpush2.bf16.msra.mxu1 %v3687_v2  ;;  %2013 = vmatprep.subr.bf16.mxu0 %v3688_v4  ;;  %v3768_v2 = vld [vmem:[#allocation5 + $0x874] ss:$24 sps:$4 sm:$0xff]   ;;  %v3763_v4 = vld [vmem:[#allocation5 + $0x2d8] ss:$24 sps:$4 sm:$0xff]  }
  0x8a   :  { %2054 = vmatprep.subr.bf16.mxu1 %v3690_v5  ;;  %v3766_v5 = vld [vmem:[#allocation5 + $0x870] ss:$24 sps:$4 sm:$0xff]  }
  0x8c   :  { %2014 = vmatpush2.bf16.msra.mxu0 %v3692_v7  ;;  %v3771_v7 = vld [vmem:[#allocation5 + $0x2ac] ss:$24 sps:$4 sm:$0xff]  }
  0x8d   :  { %2055 = vmatpush2.bf16.msra.mxu1 %v3693_v9  ;;  %2015 = vmatprep.subr.bf16.mxu0 %v3694_v12  ;;  %v3769_v9 = vld [vmem:[#allocation5 + $0x2a8] ss:$24 sps:$4 sm:$0xff]   ;;  %v3780_v12 = vld [vmem:[#allocation5 + $0x814] ss:$24 sps:$4 sm:$0xff]  }
  0x8e   :  { %2056 = vmatprep.subr.bf16.mxu1 %v3696_v13  ;;  %v3775_v13 = vld [vmem:[#allocation5 + $0x278] ss:$24 sps:$4 sm:$0xff]  }
  0x90   :  { %2016 = vmatpush2.bf16.msra.mxu0 %v3698_v14  ;;  %v3778_v14 = vld [vmem:[#allocation5 + $0x810] ss:$24 sps:$4 sm:$0xff]  }
  0x91   :  { %2057 = vmatpush2.bf16.msra.mxu1 %v3699_v15  ;;  %2067 = vmatprep.subr.bf16.mxu0 %v3708_v19  ;;  %v3783_v15 = vld [vmem:[#allocation5 + $0x24c] ss:$24 sps:$4 sm:$0xff]   ;;  %v3784_v19 = vld [vmem:[#allocation5 + $0x7e0] ss:$24 sps:$4 sm:$0xff]  }
  0x92   :  { %2122 = vmatprep.subr.bf16.mxu1 %v3711_v20  ;;  %v3789_v20 = vld [vmem:[#allocation5 + $0x21c] ss:$24 sps:$4 sm:$0xff]  }
  0x93   :  { %2018 = vmatmul.mubr.bf16.vlgmr.msra.gmra.mxu0 %v4353_v18 }
  0x94   :  { %2059 = vmatmul.mubr.bf16.vlgmr.msra.gmra.mxu1 %v4357_v23  ;;  %2068 = vmatpush1.bf16.msra.mxu0 %v3706_v24  ;;  %v3790_v24 = vld [vmem:[#allocation5 + $0x7b0] ss:$24 sps:$4 sm:$0xff]  }
  0x95   :  { %2123 = vmatpush1.bf16.msra.mxu1 %v3709_v25  ;;  %2069 = vmatprep.subr.bf16.mxu0 %v3714_v26  ;;  %v3795_v25 = vld [vmem:[#allocation5 + $0x1ec] ss:$24 sps:$4 sm:$0xff]  }
  0x96   :  { %2140 = vmatprep.mubr.bf16.mxu1 %v4270_v31  ;;  %2149 = vmatprep.subr.bf16.mxu1 %v3717_v27  ;;  %v3798_v26 = vld [vmem:[#allocation5 + $0x784] ss:$24 sps:$4 sm:$0xff]   ;;  %v3793_v27 = vld [vmem:[#allocation5 + $0x1e8] ss:$24 sps:$4 sm:$0xff]  }
  0x97   :  { %2099 = vmatprep.mubr.bf16.mxu0 %v4360_v28 }
  0x98   :  { %2070 = vmatpush1.bf16.msra.mxu0 %v3712_v30  ;;  %v3796_v30 = vld [vmem:[#allocation5 + $0x780] ss:$24 sps:$4 sm:$0xff]  }
  0x99   :  { %2071 = vmatprep.subr.bf16.mxu0 %v3720_v32  ;;  %v3801_v32 = vld [vmem:[#allocation5 + $0x1bc] ss:$24 sps:$4 sm:$0xff]  }
  0x9c   :  { %3429 = vmatmul.mubr.msk.bf16.vlgmr.msra.gmra.mxu1 %vm1981_vm0, %v4371_v35  ;;  %2072 = vmatpush1.bf16.msra.mxu0 %v3718_v34  ;;  %v3799_v34 = vld [vmem:[#allocation5 + $0x1b8] ss:$24 sps:$4 sm:$0xff]  }
  0x9d   :  { %2150 = vmatpush1.bf16.msra.mxu1 %v3715_v33  ;;  %2073 = vmatprep.subr.bf16.mxu0 %v3726_v37  ;;  %v3804_v33 = vld [vmem:[#allocation5 + $0x45c] ss:$24 sps:$4 sm:$0xff]   ;;  %v3807_v37 = vld [vmem:[#allocation5 + $0x18c] ss:$24 sps:$4 sm:$0xff]  }
  0x9e   :  { %2151 = vmatprep.subr.bf16.mxu1 %v3723_v36  ;;  %2181 = vmatprep.mubr.bf16.mxu1 %v4342_v3  ;;  %v3802_v36 = vld [vmem:[#allocation5 + $0x458] ss:$24 sps:$4 sm:$0xff]  }
  0xa0   :  { %2074 = vmatpush1.bf16.msra.mxu0 %v3724_v39  ;;  %v3805_v39 = vld [vmem:[#allocation5 + $0x188] ss:$24 sps:$4 sm:$0xff]  }
  0xa1   :  { %2152 = vmatpush1.bf16.msra.mxu1 %v3721_v38  ;;  %2075 = vmatprep.subr.bf16.mxu0 %v3732_v41  ;;  %v3810_v38 = vld [vmem:[#allocation5 + $0x42c] ss:$24 sps:$4 sm:$0xff]   ;;  %v3813_v41 = vld [vmem:[#allocation5 + $0x75c] ss:$24 sps:$4 sm:$0xff]  }
  0xa2   :  { %2153 = vmatprep.subr.bf16.mxu1 %v3729_v40  ;;  %v3808_v40 = vld [vmem:[#allocation5 + $0x428] ss:$24 sps:$4 sm:$0xff]  }
  0xa4   :  { %2076 = vmatpush1.bf16.msra.mxu0 %v3730_v43  ;;  %v3811_v43 = vld [vmem:[#allocation5 + $0x758] ss:$24 sps:$4 sm:$0xff]  }
  0xa5   :  { %2154 = vmatpush1.bf16.msra.mxu1 %v3727_v42  ;;  %2077 = vmatprep.subr.bf16.mxu0 %v3738_v46  ;;  %v3816_v42 = vld [vmem:[#allocation5 + $0x3fc] ss:$24 sps:$4 sm:$0xff]   ;;  %v3819_v46 = vld [vmem:[#allocation5 + $0x72c] ss:$24 sps:$4 sm:$0xff]  }
  0xa6   :  { %2155 = vmatprep.subr.bf16.mxu1 %v3735_v44  ;;  %v3814_v44 = vld [vmem:[#allocation5 + $0x3f8] ss:$24 sps:$4 sm:$0xff]  }
  0xa8   :  { %2078 = vmatpush1.bf16.msra.mxu0 %v3736_v48  ;;  %v3817_v48 = vld [vmem:[#allocation5 + $0x728] ss:$24 sps:$4 sm:$0xff]  }
  0xa9   :  { %2156 = vmatpush1.bf16.msra.mxu1 %v3733_v47  ;;  %2079 = vmatprep.subr.bf16.mxu0 %v3744_v50  ;;  %v3822_v47 = vld [vmem:[#allocation5 + $0x3cc] ss:$24 sps:$4 sm:$0xff]   ;;  %v3825_v50 = vld [vmem:[#allocation5 + $0x6fc] ss:$24 sps:$4 sm:$0xff]  }
  0xaa   :  { %2157 = vmatprep.subr.bf16.mxu1 %v3741_v49  ;;  %v3820_v49 = vld [vmem:[#allocation5 + $0x3c8] ss:$24 sps:$4 sm:$0xff]  }
  0xac   :  { %2080 = vmatpush1.bf16.msra.mxu0 %v3742_v52  ;;  %v3823_v52 = vld [vmem:[#allocation5 + $0x6f8] ss:$24 sps:$4 sm:$0xff]  }
  0xad   :  { %2158 = vmatpush1.bf16.msra.mxu1 %v3739_v51  ;;  %2081 = vmatprep.subr.bf16.mxu0 %v3750_v54  ;;  %v3828_v51 = vld [vmem:[#allocation5 + $0x39c] ss:$24 sps:$4 sm:$0xff]   ;;  %v3831_v54 = vld [vmem:[#allocation5 + $0x6cc] ss:$24 sps:$4 sm:$0xff]  }
  0xae   :  { %2159 = vmatprep.subr.bf16.mxu1 %v3747_v53  ;;  %v3826_v53 = vld [vmem:[#allocation5 + $0x398] ss:$24 sps:$4 sm:$0xff]  }
  0xb0   :  { %2082 = vmatpush1.bf16.msra.mxu0 %v3748_v56  ;;  %v3829_v56 = vld [vmem:[#allocation5 + $0x6c8] ss:$24 sps:$4 sm:$0xff]  }
  0xb1   :  { %2160 = vmatpush1.bf16.msra.mxu1 %v3745_v55  ;;  %2083 = vmatprep.subr.bf16.mxu0 %v3756_v58  ;;  %v3834_v55 = vld [vmem:[#allocation5 + $0x36c] ss:$24 sps:$4 sm:$0xff]   ;;  %v3837_v58 = vld [vmem:[#allocation5 + $0x69c] ss:$24 sps:$4 sm:$0xff]  }
  0xb2   :  { %2161 = vmatprep.subr.bf16.mxu1 %v3753_v57  ;;  %v3832_v57 = vld [vmem:[#allocation5 + $0x368] ss:$24 sps:$4 sm:$0xff]  }
  0xb4   :  { %2084 = vmatpush2.bf16.msra.mxu0 %v3754_v60  ;;  %v3835_v60 = vld [vmem:[#allocation5 + $0x698] ss:$24 sps:$4 sm:$0xff]  }
  0xb5   :  { %2162 = vmatpush1.bf16.msra.mxu1 %v3751_v59  ;;  %2085 = vmatprep.subr.bf16.mxu0 %v3762_v62  ;;  %v3840_v59 = vld [vmem:[#allocation5 + $0x33c] ss:$24 sps:$4 sm:$0xff]   ;;  %v3843_v62 = vld [vmem:[#allocation5 + $0x66c] ss:$24 sps:$4 sm:$0xff]  }
  0xb6   :  { %2163 = vmatprep.subr.bf16.mxu1 %v3759_v61  ;;  %v3838_v61 = vld [vmem:[#allocation5 + $0x338] ss:$24 sps:$4 sm:$0xff]  }
  0xb8   :  { %2086 = vmatpush2.bf16.msra.mxu0 %v3760_v0  ;;  %v3841_v0 = vld [vmem:[#allocation5 + $0x668] ss:$24 sps:$4 sm:$0xff]  }
  0xb9   :  { %2164 = vmatpush1.bf16.msra.mxu1 %v3757_v63  ;;  %2087 = vmatprep.subr.bf16.mxu0 %v3768_v2  ;;  %v3846_v63 = vld [vmem:[#allocation5 + $0x30c] ss:$24 sps:$4 sm:$0xff]   ;;  %v3849_v2 = vld [vmem:[#allocation5 + $0x63c] ss:$24 sps:$4 sm:$0xff]  }
  0xba   :  { %2165 = vmatprep.subr.bf16.mxu1 %v3765_v1  ;;  %v3844_v1 = vld [vmem:[#allocation5 + $0x308] ss:$24 sps:$4 sm:$0xff]  }
  0xbc   :  { %2088 = vmatpush2.bf16.msra.mxu0 %v3766_v5  ;;  %v3847_v5 = vld [vmem:[#allocation5 + $0x638] ss:$24 sps:$4 sm:$0xff]  }
  0xbd   :  { %2166 = vmatpush2.bf16.msra.mxu1 %v3763_v4  ;;  %2089 = vmatprep.subr.bf16.mxu0 %v3774_v8  ;;  %v3852_v4 = vld [vmem:[#allocation5 + $0x5dc] ss:$24 sps:$4 sm:$0xff]   ;;  %v3855_v8 = vld [vmem:[#allocation5 + $0x60c] ss:$24 sps:$4 sm:$0xff]  }
  0xbe   :  { %2167 = vmatprep.subr.bf16.mxu1 %v3771_v7  ;;  %v3850_v7 = vld [vmem:[#allocation5 + $0x5d8] ss:$24 sps:$4 sm:$0xff]  }
  0xc0   :  { %2090 = vmatpush2.bf16.msra.mxu0 %v3772_v10  ;;  %v3853_v10 = vld [vmem:[#allocation5 + $0x608] ss:$24 sps:$4 sm:$0xff]  }
  0xc1   :  { %2168 = vmatpush2.bf16.msra.mxu1 %v3769_v9  ;;  %2091 = vmatprep.subr.bf16.mxu0 %v3780_v12  ;;  %v3858_v9 = vld [vmem:[#allocation5 + $0x5ac] ss:$24 sps:$4 sm:$0xff]   ;;  %v3861_v12 = vld [vmem:[#allocation5 + $0x8dc] ss:$24 sps:$4 sm:$0xff]  }
  0xc2   :  { %2169 = vmatprep.subr.bf16.mxu1 %v3777_v11  ;;  %v3856_v11 = vld [vmem:[#allocation5 + $0x5a8] ss:$24 sps:$4 sm:$0xff]  }
  0xc4   :  { %2092 = vmatpush2.bf16.msra.mxu0 %v3778_v14  ;;  %v3859_v14 = vld [vmem:[#allocation5 + $0x8d8] ss:$24 sps:$4 sm:$0xff]  }
  0xc5   :  { %2170 = vmatpush2.bf16.msra.mxu1 %v3775_v13  ;;  %2093 = vmatprep.subr.bf16.mxu0 %v3786_v16  ;;  %v3864_v13 = vld [vmem:[#allocation5 + $0x57c] ss:$24 sps:$4 sm:$0xff]   ;;  %v3867_v16 = vld [vmem:[#allocation5 + $0x8ac] ss:$24 sps:$4 sm:$0xff]  }
  0xc6   :  { %2171 = vmatprep.subr.bf16.mxu1 %v3783_v15  ;;  %v3862_v15 = vld [vmem:[#allocation5 + $0x578] ss:$24 sps:$4 sm:$0xff]  }
  0xc8   :  { %2094 = vmatpush2.bf16.msra.mxu0 %v3784_v19  ;;  %v3865_v19 = vld [vmem:[#allocation5 + $0x8a8] ss:$24 sps:$4 sm:$0xff]  }
  0xc9   :  { %2172 = vmatpush2.bf16.msra.mxu1 %v3781_v17  ;;  %2095 = vmatprep.subr.bf16.mxu0 %v3792_v21  ;;  %v3870_v17 = vld [vmem:[#allocation5 + $0x54c] ss:$24 sps:$4 sm:$0xff]   ;;  %v3873_v21 = vld [vmem:[#allocation5 + $0x87c] ss:$24 sps:$4 sm:$0xff]  }
  0xca   :  { %2173 = vmatprep.subr.bf16.mxu1 %v3789_v20  ;;  %v3868_v20 = vld [vmem:[#allocation5 + $0x548] ss:$24 sps:$4 sm:$0xff]  }
  0xcc   :  { %2096 = vmatpush2.bf16.msra.mxu0 %v3790_v24  ;;  %v3871_v24 = vld [vmem:[#allocation5 + $0x878] ss:$24 sps:$4 sm:$0xff]  }
  0xcd   :  { %2174 = vmatpush2.bf16.msra.mxu1 %v3787_v22  ;;  %2097 = vmatprep.subr.bf16.mxu0 %v3798_v26  ;;  %v3876_v22 = vld [vmem:[#allocation5 + $0x51c] ss:$24 sps:$4 sm:$0xff]   ;;  %v3879_v26 = vld [vmem:[#allocation5 + $0x84c] ss:$24 sps:$4 sm:$0xff]  }
  0xce   :  { %2175 = vmatprep.subr.bf16.mxu1 %v3795_v25  ;;  %v3874_v25 = vld [vmem:[#allocation5 + $0x518] ss:$24 sps:$4 sm:$0xff]  }
  0xd0   :  { %2098 = vmatpush2.bf16.msra.mxu0 %v3796_v30  ;;  %v3877_v30 = vld [vmem:[#allocation5 + $0x848] ss:$24 sps:$4 sm:$0xff]  }
  0xd1   :  { %2176 = vmatpush2.bf16.msra.mxu1 %v3793_v27  ;;  %2190 = vmatprep.subr.bf16.mxu0 %v3804_v33  ;;  %v3882_v27 = vld [vmem:[#allocation5 + $0x4ec] ss:$24 sps:$4 sm:$0xff]   ;;  %v3885_v33 = vld [vmem:[#allocation5 + $0x81c] ss:$24 sps:$4 sm:$0xff]  }
  0xd2   :  { %2177 = vmatprep.subr.bf16.mxu1 %v3801_v32  ;;  %v3880_v32 = vld [vmem:[#allocation5 + $0x4e8] ss:$24 sps:$4 sm:$0xff]  }
  0xd3   :  { %2100 = vmatmul.mubr.bf16.vlgmr.msra.gmra.mxu0 %v4365_v29 }
  0xd4   :  { %2191 = vmatpush1.bf16.msra.mxu0 %v3802_v36  ;;  %2222 = vmatprep.mubr.bf16.mxu0 %v4346_v6  ;;  %v3883_v36 = vld [vmem:[#allocation5 + $0x818] ss:$24 sps:$4 sm:$0xff]  }
  0xd5   :  { %2178 = vmatpush2.bf16.msra.mxu1 %v3799_v34  ;;  %2192 = vmatprep.subr.bf16.mxu0 %v3810_v38  ;;  %v3888_v34 = vld [vmem:[#allocation5 + $0x4bc] ss:$24 sps:$4 sm:$0xff]   ;;  %v3891_v38 = vld [vmem:[#allocation5 + $0x7ec] ss:$24 sps:$4 sm:$0xff]  }
  0xd6   :  { %2179 = vmatprep.subr.bf16.mxu1 %v3807_v37  ;;  %v3886_v37 = vld [vmem:[#allocation5 + $0x4b8] ss:$24 sps:$4 sm:$0xff]  }
  0xd8   :  { %2193 = vmatpush1.bf16.msra.mxu0 %v3808_v40  ;;  %v3889_v40 = vld [vmem:[#allocation5 + $0x7e8] ss:$24 sps:$4 sm:$0xff]  }
  0xd9   :  { %2180 = vmatpush2.bf16.msra.mxu1 %v3805_v39  ;;  %2194 = vmatprep.subr.bf16.mxu0 %v3816_v42  ;;  %v3894_v39 = vld [vmem:[#allocation5 + $0x48c] ss:$24 sps:$4 sm:$0xff]   ;;  %v3897_v42 = vld [vmem:[#allocation5 + $0x7bc] ss:$24 sps:$4 sm:$0xff]  }
  0xda   :  { %2231 = vmatprep.subr.bf16.mxu1 %v3813_v41  ;;  %v3892_v41 = vld [vmem:[#allocation5 + $0x488] ss:$24 sps:$4 sm:$0xff]  }
  0xdc   :  { %2182 = vmatmul.mubr.bf16.vlgmr.msra.gmra.mxu1 %v4353_v18  ;;  %2195 = vmatpush1.bf16.msra.mxu0 %v3814_v44  ;;  %v3895_v44 = vld [vmem:[#allocation5 + $0x7b8] ss:$24 sps:$4 sm:$0xff]  }
  0xdd   :  { %2232 = vmatpush1.bf16.msra.mxu1 %v3811_v43  ;;  %2196 = vmatprep.subr.bf16.mxu0 %v3822_v47  ;;  %v3900_v43 = vld [vmem:[#allocation5 + $0x90c] ss:$24 sps:$4 sm:$0xff]  }
  0xde   :  { %2233 = vmatprep.subr.bf16.mxu1 %v3819_v46  ;;  %2263 = vmatprep.mubr.bf16.mxu1 %v4360_v28  ;;  %v3898_v46 = vld [vmem:[#allocation5 + $0x908] ss:$24 sps:$4 sm:$0xff]   ;;  %v3903_v47 = vld [vmem:[#allocation5 + $0x78c] ss:$24 sps:$4 sm:$0xff]  }
  0xe0   :  { %2197 = vmatpush1.bf16.msra.mxu0 %v3820_v49  ;;  %v3901_v49 = vld [vmem:[#allocation5 + $0x788] ss:$24 sps:$4 sm:$0xff]  }
  0xe1   :  { %2234 = vmatpush1.bf16.msra.mxu1 %v3817_v48  ;;  %2198 = vmatprep.subr.bf16.mxu0 %v3828_v51  ;;  %v3906_v48 = vld [vmem:[#allocation5 + $0x164] ss:$24 sps:$4 sm:$0xff]   ;;  %v3904_v51 = vld [vmem:[#allocation5 + $0x160] ss:$24 sps:$4 sm:$0xff]  }
  0xe2   :  { %2235 = vmatprep.subr.bf16.mxu1 %v3825_v50  ;;  %v3909_v50 = vld [vmem:[#allocation5 + $0x464] ss:$24 sps:$4 sm:$0xff]  }
  0xe4   :  { %2199 = vmatpush1.bf16.msra.mxu0 %v3826_v53  ;;  %v3912_v53 = vld [vmem:[#allocation5 + $0x134] ss:$24 sps:$4 sm:$0xff]  }
  0xe5   :  { %2236 = vmatpush1.bf16.msra.mxu1 %v3823_v52  ;;  %2200 = vmatprep.subr.bf16.mxu0 %v3834_v55  ;;  %v3907_v52 = vld [vmem:[#allocation5 + $0x460] ss:$24 sps:$4 sm:$0xff]   ;;  %v3910_v55 = vld [vmem:[#allocation5 + $0x130] ss:$24 sps:$4 sm:$0xff]  }
  0xe6   :  { %2237 = vmatprep.subr.bf16.mxu1 %v3831_v54  ;;  %v3915_v54 = vld [vmem:[#allocation5 + $0x434] ss:$24 sps:$4 sm:$0xff]  }
  0xe8   :  { %2201 = vmatpush1.bf16.msra.mxu0 %v3832_v57  ;;  %v3918_v57 = vld [vmem:[#allocation5 + $0x104] ss:$24 sps:$4 sm:$0xff]  }
  0xe9   :  { %2238 = vmatpush1.bf16.msra.mxu1 %v3829_v56  ;;  %2202 = vmatprep.subr.bf16.mxu0 %v3840_v59  ;;  %v3913_v56 = vld [vmem:[#allocation5 + $0x430] ss:$24 sps:$4 sm:$0xff]   ;;  %v3916_v59 = vld [vmem:[#allocation5 + $0x100] ss:$24 sps:$4 sm:$0xff]  }
  0xea   :  { %2239 = vmatprep.subr.bf16.mxu1 %v3837_v58  ;;  %v3921_v58 = vld [vmem:[#allocation5 + $0x404] ss:$24 sps:$4 sm:$0xff]  }
  0xec   :  { %2203 = vmatpush1.bf16.msra.mxu0 %v3838_v61  ;;  %v3924_v61 = vld [vmem:[#allocation5 + $0xd4] ss:$24 sps:$4 sm:$0xff]  }
  0xed   :  { %2240 = vmatpush1.bf16.msra.mxu1 %v3835_v60  ;;  %2204 = vmatprep.subr.bf16.mxu0 %v3846_v63  ;;  %v3919_v60 = vld [vmem:[#allocation5 + $0x400] ss:$24 sps:$4 sm:$0xff]   ;;  %v3922_v63 = vld [vmem:[#allocation5 + $0xd0] ss:$24 sps:$4 sm:$0xff]  }
  0xee   :  { %2241 = vmatprep.subr.bf16.mxu1 %v3843_v62  ;;  %v3927_v62 = vld [vmem:[#allocation5 + $0x3d4] ss:$24 sps:$4 sm:$0xff]  }
  0xf0   :  { %2205 = vmatpush1.bf16.msra.mxu0 %v3844_v1  ;;  %v3930_v1 = vld [vmem:[#allocation5 + $0xa4] ss:$24 sps:$4 sm:$0xff]  }
  0xf1   :  { %2242 = vmatpush1.bf16.msra.mxu1 %v3841_v0  ;;  %2206 = vmatprep.subr.bf16.mxu0 %v3852_v4  ;;  %v3925_v0 = vld [vmem:[#allocation5 + $0x3d0] ss:$24 sps:$4 sm:$0xff]   ;;  %v3928_v4 = vld [vmem:[#allocation5 + $0xa0] ss:$24 sps:$4 sm:$0xff]  }
  0xf2   :  { %2243 = vmatprep.subr.bf16.mxu1 %v3849_v2  ;;  %v3933_v2 = vld [vmem:[#allocation5 + $0x3a4] ss:$24 sps:$4 sm:$0xff]  }
  0xf4   :  { %2207 = vmatpush2.bf16.msra.mxu0 %v3850_v7  ;;  %v3934_v7 = vld [vmem:[#allocation5 + $0x70] ss:$24 sps:$4 sm:$0xff]  }
  0xf5   :  { %2244 = vmatpush1.bf16.msra.mxu1 %v3847_v5  ;;  %2208 = vmatprep.subr.bf16.mxu0 %v3858_v9  ;;  %v3939_v5 = vld [vmem:[#allocation5 + $0x374] ss:$24 sps:$4 sm:$0xff]   ;;  %v3942_v9 = vld [vmem:[#allocation5 + $0x44] ss:$24 sps:$4 sm:$0xff]  }
  0xf6   :  { %2245 = vmatprep.subr.bf16.mxu1 %v3855_v8  ;;  %v3937_v8 = vld [vmem:[#allocation5 + $0x370] ss:$24 sps:$4 sm:$0xff]  }
  0xf8   :  { %2209 = vmatpush2.bf16.msra.mxu0 %v3856_v11  ;;  %v3940_v11 = vld [vmem:[#allocation5 + $0x40] ss:$24 sps:$4 sm:$0xff]  }
  0xf9   :  { %2246 = vmatpush1.bf16.msra.mxu1 %v3853_v10  ;;  %2210 = vmatprep.subr.bf16.mxu0 %v3864_v13  ;;  %v3945_v10 = vld [vmem:[#allocation5 + $0x344] ss:$24 sps:$4 sm:$0xff]   ;;  %v3948_v13 = vld [vmem:[#allocation5 + $0x14] ss:$24 sps:$4 sm:$0xff]  }
  0xfa   :  { %2247 = vmatprep.subr.bf16.mxu1 %v3861_v12  ;;  %v3943_v12 = vld [vmem:[#allocation5 + $0x340] ss:$24 sps:$4 sm:$0xff]  }
  0xfc   :  { %2211 = vmatpush2.bf16.msra.mxu0 %v3862_v15  ;;  %v3946_v15 = vld [vmem:[#allocation5 + $0x10] ss:$24 sps:$4 sm:$0xff]  }
  0xfd   :  { %2248 = vmatpush2.bf16.msra.mxu1 %v3859_v14  ;;  %2212 = vmatprep.subr.bf16.mxu0 %v3870_v17  ;;  %v3951_v14 = vld [vmem:[#allocation5 + $0x314] ss:$24 sps:$4 sm:$0xff]   ;;  %v3954_v17 = vld [vmem:[#allocation5 + $0x2e4] ss:$24 sps:$4 sm:$0xff]  }
  0xfe   :  { %2249 = vmatprep.subr.bf16.mxu1 %v3867_v16  ;;  %v3949_v16 = vld [vmem:[#allocation5 + $0x310] ss:$24 sps:$4 sm:$0xff]  }
 0x100   :  { %2213 = vmatpush2.bf16.msra.mxu0 %v3868_v20  ;;  %v3952_v20 = vld [vmem:[#allocation5 + $0x2e0] ss:$24 sps:$4 sm:$0xff]  }
 0x101   :  { %2250 = vmatpush2.bf16.msra.mxu1 %v3865_v19  ;;  %2214 = vmatprep.subr.bf16.mxu0 %v3876_v22  ;;  %v3957_v19 = vld [vmem:[#allocation5 + $0x5e4] ss:$24 sps:$4 sm:$0xff]   ;;  %v3960_v22 = vld [vmem:[#allocation5 + $0x2b4] ss:$24 sps:$4 sm:$0xff]  }
 0x102   :  { %2251 = vmatprep.subr.bf16.mxu1 %v3873_v21  ;;  %v3955_v21 = vld [vmem:[#allocation5 + $0x5e0] ss:$24 sps:$4 sm:$0xff]  }
 0x104   :  { %2215 = vmatpush2.bf16.msra.mxu0 %v3874_v25  ;;  %v3958_v25 = vld [vmem:[#allocation5 + $0x2b0] ss:$24 sps:$4 sm:$0xff]  }
 0x105   :  { %2252 = vmatpush2.bf16.msra.mxu1 %v3871_v24  ;;  %2216 = vmatprep.subr.bf16.mxu0 %v3882_v27  ;;  %v3963_v24 = vld [vmem:[#allocation5 + $0x5b4] ss:$24 sps:$4 sm:$0xff]   ;;  %v3966_v27 = vld [vmem:[#allocation5 + $0x284] ss:$24 sps:$4 sm:$0xff]  }
 0x106   :  { %2253 = vmatprep.subr.bf16.mxu1 %v3879_v26  ;;  %v3961_v26 = vld [vmem:[#allocation5 + $0x5b0] ss:$24 sps:$4 sm:$0xff]  }
 0x108   :  { %2217 = vmatpush2.bf16.msra.mxu0 %v3880_v32  ;;  %v3964_v32 = vld [vmem:[#allocation5 + $0x280] ss:$24 sps:$4 sm:$0xff]  }
 0x109   :  { %2254 = vmatpush2.bf16.msra.mxu1 %v3877_v30  ;;  %2218 = vmatprep.subr.bf16.mxu0 %v3888_v34  ;;  %v3969_v30 = vld [vmem:[#allocation5 + $0x584] ss:$24 sps:$4 sm:$0xff]   ;;  %v3972_v34 = vld [vmem:[#allocation5 + $0x254] ss:$24 sps:$4 sm:$0xff]  }
 0x10a   :  { %2255 = vmatprep.subr.bf16.mxu1 %v3885_v33  ;;  %v3967_v33 = vld [vmem:[#allocation5 + $0x580] ss:$24 sps:$4 sm:$0xff]  }
 0x10c   :  { %2219 = vmatpush2.bf16.msra.mxu0 %v3886_v37  ;;  %v3970_v37 = vld [vmem:[#allocation5 + $0x250] ss:$24 sps:$4 sm:$0xff]  }
 0x10d   :  { %2256 = vmatpush2.bf16.msra.mxu1 %v3883_v36  ;;  %2220 = vmatprep.subr.bf16.mxu0 %v3894_v39  ;;  %v3975_v36 = vld [vmem:[#allocation5 + $0x554] ss:$24 sps:$4 sm:$0xff]   ;;  %v3978_v39 = vld [vmem:[#allocation5 + $0x224] ss:$24 sps:$4 sm:$0xff]  }
 0x10e   :  { %2257 = vmatprep.subr.bf16.mxu1 %v3891_v38  ;;  %v3973_v38 = vld [vmem:[#allocation5 + $0x550] ss:$24 sps:$4 sm:$0xff]  }
 0x110   :  { %2221 = vmatpush2.bf16.msra.mxu0 %v3892_v41  ;;  %v3976_v41 = vld [vmem:[#allocation5 + $0x220] ss:$24 sps:$4 sm:$0xff]  }
 0x111   :  { %2258 = vmatpush2.bf16.msra.mxu1 %v3889_v40  ;;  %2286 = vmatprep.subr.bf16.mxu0 %v3900_v43  ;;  %v3981_v40 = vld [vmem:[#allocation5 + $0x524] ss:$24 sps:$4 sm:$0xff]   ;;  %v3984_v43 = vld [vmem:[#allocation5 + $0x1f4] ss:$24 sps:$4 sm:$0xff]  }
 0x112   :  { %2259 = vmatprep.subr.bf16.mxu1 %v3897_v42  ;;  %v3979_v42 = vld [vmem:[#allocation5 + $0x520] ss:$24 sps:$4 sm:$0xff]  }
 0x113   :  { %2223 = vmatmul.mubr.bf16.vlgmr.msra.gmra.mxu0 %v4357_v23 }
 0x114   :  { %2287 = vmatpush1.bf16.msra.mxu0 %v3898_v46  ;;  %2304 = vmatprep.mubr.bf16.mxu0 %v4270_v31  ;;  %v3982_v46 = vld [vmem:[#allocation5 + $0x1f0] ss:$24 sps:$4 sm:$0xff]  }
 0x115   :  { %2260 = vmatpush2.bf16.msra.mxu1 %v3895_v44  ;;  %2313 = vmatprep.subr.bf16.mxu0 %v3906_v48  ;;  %v3987_v44 = vld [vmem:[#allocation5 + $0x4f4] ss:$24 sps:$4 sm:$0xff]   ;;  %v3990_v48 = vld [vmem:[#allocation5 + $0x1c4] ss:$24 sps:$4 sm:$0xff]  }
 0x116   :  { %2261 = vmatprep.subr.bf16.mxu1 %v3903_v47  ;;  %v3985_v47 = vld [vmem:[#allocation5 + $0x4f0] ss:$24 sps:$4 sm:$0xff]  }
 0x119   :  { %2262 = vmatpush2.bf16.msra.mxu1 %v3901_v49  ;;  %v3993_v49 = vld [vmem:[#allocation5 + $0x4c4] ss:$24 sps:$4 sm:$0xff]  }
 0x11a   :  { %2354 = vmatprep.subr.bf16.mxu1 %v3909_v50  ;;  %v3988_v50 = vld [vmem:[#allocation5 + $0x1c0] ss:$24 sps:$4 sm:$0xff]  }
 0x11b   :  { %3430 = vmatmul.mubr.msk.bf16.vlgmr.msra.gmra.mxu0 %vm1981_vm0, %v4371_v35 }
 0x11c   :  { %2264 = vmatmul.mubr.bf16.vlgmr.msra.gmra.mxu1 %v4365_v29  ;;  %2314 = vmatpush1.bf16.msra.mxu0 %v3904_v51  ;;  %v3991_v51 = vld [vmem:[#allocation5 + $0x4c0] ss:$24 sps:$4 sm:$0xff]  }
 0x11d   :  { %2355 = vmatpush1.bf16.msra.mxu1 %v3907_v52  ;;  %2315 = vmatprep.subr.bf16.mxu0 %v3912_v53  ;;  %v3996_v52 = vld [vmem:[#allocation5 + $0x194] ss:$24 sps:$4 sm:$0xff]  }
 0x11e   :  { %2356 = vmatprep.subr.bf16.mxu1 %v3915_v54  ;;  %2345 = vmatprep.mubr.bf16.mxu0 %v4342_v3  ;;  %v3931_v3 = vld [vmem:[#allocation5 + $0x3a0] ss:$24 sps:$4 sm:$0xff]   ;;  %v3999_v53 = vld [vmem:[#allocation5 + $0x494] ss:$24 sps:$4 sm:$0xff]  }
 0x11f   :  { %2386 = vmatprep.mubr.bf16.mxu1 %v4346_v6  ;;  %v3936_v6 = vld [vmem:[#allocation5 + $0x74] ss:$24 sps:$4 sm:$0xff]  }
 0x120   :  { %2316 = vmatpush1.bf16.msra.mxu0 %v3910_v55 }
 0x121   :  { %2357 = vmatpush1.bf16.msra.mxu1 %v3913_v56  ;;  %2317 = vmatprep.subr.bf16.mxu0 %v3918_v57  ;;  %v3994_v56 = vld [vmem:[#allocation5 + $0x190] ss:$24 sps:$4 sm:$0xff]  }
 0x122   :  { %2358 = vmatprep.subr.bf16.mxu1 %v3921_v58  ;;  %v3997_v57 = vld [vmem:[#allocation5 + $0x490] ss:$24 sps:$4 sm:$0xff]  }
 0x124   :  { %2318 = vmatpush1.bf16.msra.mxu0 %v3916_v59 }
 0x125   :  { %2359 = vmatpush1.bf16.msra.mxu1 %v3919_v60  ;;  %2319 = vmatprep.subr.bf16.mxu0 %v3924_v61  ;;  %v4002_v60 = vld [vmem:[#allocation5 + $0x764] ss:$24 sps:$4 sm:$0xff]   ;;  %v4029_v61 = vld [vmem:[#allocation5 + $0x914] ss:$24 sps:$4 sm:$0xff]  }
 0x126   :  { %2360 = vmatprep.subr.bf16.mxu1 %v3927_v62 }
 0x128   :  { %2320 = vmatpush1.bf16.msra.mxu0 %v3922_v63 }
 0x129   :  { %2361 = vmatpush1.bf16.msra.mxu1 %v3925_v0  ;;  %2321 = vmatprep.subr.bf16.mxu0 %v3930_v1  ;;  %v4000_v0 = vld [vmem:[#allocation5 + $0x760] ss:$24 sps:$4 sm:$0xff]   ;;  %v4027_v1 = vld [vmem:[#allocation5 + $0x910] ss:$24 sps:$4 sm:$0xff]  }
 0x12a   :  { %2362 = vmatprep.subr.bf16.mxu1 %v3933_v2 }
 0x12c   :  { %2322 = vmatpush1.bf16.msra.mxu0 %v3928_v4  ;;  %v4005_v4 = vld [vmem:[#allocation5 + $0x734] ss:$24 sps:$4 sm:$0xff]  }
 0x12d   :  { %2363 = vmatpush1.bf16.msra.mxu1 %v3931_v3  ;;  %2323 = vmatprep.subr.bf16.mxu0 %v3936_v6  ;;  %v4033_v6 = vld [vmem:[#allocation8 + $0x78] sm:$0xff]  }
 0x12e   :  { %2364 = vmatprep.subr.bf16.mxu1 %v3939_v5 }
 0x130   :  { %2324 = vmatpush1.bf16.msra.mxu0 %v3934_v7  ;;  %v4003_v7 = vld [vmem:[#allocation5 + $0x730] ss:$24 sps:$4 sm:$0xff]  }
 0x131   :  { %2365 = vmatpush1.bf16.msra.mxu1 %v3937_v8  ;;  %2325 = vmatprep.subr.bf16.mxu0 %v3942_v9  ;;  %v4008_v8 = vld [vmem:[#allocation5 + $0x704] ss:$24 sps:$4 sm:$0xff]  }
 0x132   :  { %2366 = vmatprep.subr.bf16.mxu1 %v3945_v10 }
 0x134   :  { %2326 = vmatpush1.bf16.msra.mxu0 %v3940_v11  ;;  %v4006_v11 = vld [vmem:[#allocation5 + $0x700] ss:$24 sps:$4 sm:$0xff]  }
 0x135   :  { %2367 = vmatpush1.bf16.msra.mxu1 %v3943_v12  ;;  %2327 = vmatprep.subr.bf16.mxu0 %v3948_v13  ;;  %v4038_v12 = vld [vmem:[#allocation8 + $0x70] sm:$0xff]  }
 0x136   :  { %2368 = vmatprep.subr.bf16.mxu1 %v3951_v14  ;;  %v4009_v14 = vld [vmem:[#allocation5 + $0x6d0] ss:$24 sps:$4 sm:$0xff]  }
 0x138   :  { %2328 = vmatpush1.bf16.msra.mxu0 %v3946_v15  ;;  %v4014_v15 = vld [vmem:[#allocation5 + $0x6a4] ss:$24 sps:$4 sm:$0xff]  }
 0x139   :  { %2369 = vmatpush1.bf16.msra.mxu1 %v3949_v16  ;;  %2329 = vmatprep.subr.bf16.mxu0 %v3954_v17  ;;  %v4043_v16 = vld [vmem:[#allocation8 + $0x68] sm:$0xff]  }
 0x13a   :  { %2370 = vmatprep.subr.bf16.mxu1 %v3957_v19  ;;  %v4044_v17 = vld [vmem:[#allocation8 + $0x28] sm:$0xff]   ;;  %v4017_v19 = vld [vmem:[#allocation5 + $0x674] ss:$24 sps:$4 sm:$0xff]  }
 0x13c   :  { %2330 = vmatpush2.bf16.msra.mxu0 %v3952_v20  ;;  %v4048_v20 = vld [vmem:[#allocation8 + $0x60] sm:$0xff]  }
 0x13d   :  { %2371 = vmatpush2.bf16.msra.mxu1 %v3955_v21  ;;  %2331 = vmatprep.subr.bf16.mxu0 %v3960_v22  ;;  %v4015_v21 = vld [vmem:[#allocation5 + $0x670] ss:$24 sps:$4 sm:$0xff]   ;;  %v4020_v22 = vld [vmem:[#allocation5 + $0x644] ss:$24 sps:$4 sm:$0xff]  }
 0x13e   :  { %2372 = vmatprep.subr.bf16.mxu1 %v3963_v24  ;;  %v4053_v24 = vld [vmem:[#allocation8 + $0x58] sm:$0xff]  }
 0x140   :  { %2332 = vmatpush2.bf16.msra.mxu0 %v3958_v25  ;;  %v4018_v25 = vld [vmem:[#allocation5 + $0x640] ss:$24 sps:$4 sm:$0xff]  }
 0x141   :  { %2373 = vmatpush2.bf16.msra.mxu1 %v3961_v26  ;;  %2333 = vmatprep.subr.bf16.mxu0 %v3966_v27  ;;  %v4054_v26 = vld [vmem:[#allocation8 + $0x18] sm:$0xff]  }
 0x142   :  { %2374 = vmatprep.subr.bf16.mxu1 %v3969_v30  ;;  %v4023_v27 = vld [vmem:[#allocation5 + $0x614] ss:$24 sps:$4 sm:$0xff]  }
 0x143   :  { %v4058_v30 = vld [vmem:[#allocation8 + $0x50] sm:$0xff]  }
 0x144   :  { %2334 = vmatpush2.bf16.msra.mxu0 %v3964_v32  ;;  %v4021_v32 = vld [vmem:[#allocation5 + $0x610] ss:$24 sps:$4 sm:$0xff]  }
 0x145   :  { %2375 = vmatpush2.bf16.msra.mxu1 %v3967_v33  ;;  %2335 = vmatprep.subr.bf16.mxu0 %v3972_v34  ;;  %v4059_v33 = vld [vmem:[#allocation8 + $0x10] sm:$0xff]  }
 0x146   :  { %2376 = vmatprep.subr.bf16.mxu1 %v3975_v36  ;;  %v4026_v34 = vld [vmem:[#allocation5 + $0x8e4] ss:$24 sps:$4 sm:$0xff]  }
 0x147   :  { %v4063_v36 = vld [vmem:[#allocation8 + $0x48] sm:$0xff]  }
 0x148   :  { %2336 = vmatpush2.bf16.msra.mxu0 %v3970_v37  ;;  %v4024_v37 = vld [vmem:[#allocation5 + $0x8e0] ss:$24 sps:$4 sm:$0xff]  }
 0x149   :  { %2377 = vmatpush2.bf16.msra.mxu1 %v3973_v38  ;;  %2337 = vmatprep.subr.bf16.mxu0 %v3978_v39  ;;  %v4064_v38 = vld [vmem:[#allocation8 + $0x8] sm:$0xff]   ;;  %v4032_v39 = vld [vmem:[#allocation5 + $0x8b4] ss:$24 sps:$4 sm:$0xff]  }
 0x14a   :  { %2378 = vmatprep.subr.bf16.mxu1 %v3981_v40  ;;  %v4065_v40 = vld [vmem:[#allocation8 + $0x40] sm:$0xff]  }
 0x14c   :  { %2338 = vmatpush2.bf16.msra.mxu0 %v3976_v41  ;;  %v4030_v41 = vld [vmem:[#allocation5 + $0x8b0] ss:$24 sps:$4 sm:$0xff]  }
 0x14d   :  { %2379 = vmatpush2.bf16.msra.mxu1 %v3979_v42  ;;  %2339 = vmatprep.subr.bf16.mxu0 %v3984_v43  ;;  %v4066_v42 = vld [vmem:[#allocation8] sm:$0xff]  }
 0x14e   :  { %2380 = vmatprep.subr.bf16.mxu1 %v3987_v44  ;;  %v4037_v43 = vld [vmem:[#allocation5 + $0x884] ss:$24 sps:$4 sm:$0xff]   ;;  %v4067_v44 = vld [vmem:[#allocation8 + $0xf8] sm:$0xff]  }
 0x150   :  { %2340 = vmatpush2.bf16.msra.mxu0 %v3982_v46  ;;  %v4035_v46 = vld [vmem:[#allocation5 + $0x880] ss:$24 sps:$4 sm:$0xff]  }
 0x151   :  { %2381 = vmatpush2.bf16.msra.mxu1 %v3985_v47  ;;  %2341 = vmatprep.subr.bf16.mxu0 %v3990_v48  ;;  %v4042_v47 = vld [vmem:[#allocation5 + $0x854] ss:$24 sps:$4 sm:$0xff]   ;;  %v4040_v48 = vld [vmem:[#allocation5 + $0x850] ss:$24 sps:$4 sm:$0xff]  }
 0x152   :  { %2382 = vmatprep.subr.bf16.mxu1 %v3993_v49  ;;  %v4047_v49 = vld [vmem:[#allocation5 + $0x824] ss:$24 sps:$4 sm:$0xff]  }
 0x153   :  { %v4387_v54 = vpop.f32.mrf.mxu0 }
 0x154   :  { %v4389_v55 = vpop.f32.mrf.mxu1  ;;  %2342 = vmatpush2.bf16.msra.mxu0 %v3988_v50  ;;  %v406_v50 = vsub.s32 0, %v4334_v45 }
 0x155   :  { %2383 = vmatpush2.bf16.msra.mxu1 %v3991_v51  ;;  %v4391_v58 = vpop.f32.mrf.mxu0  ;;  %2343 = vmatprep.subr.bf16.mxu0 %v3996_v52  ;;  %v4406_v51 = vld [vmem:[#allocation7] sm:$0x3f]  ;;  %v410_v52 = vsub.s32 1, %v4334_v45 }
 0x156   :  { %v4393_v59 = vpop.f32.mrf.mxu1  ;;  %2384 = vmatprep.subr.bf16.mxu1 %v3999_v53  ;;  %v4045_v53 = vld [vmem:[#allocation5 + $0x820] ss:$24 sps:$4 sm:$0xff]  }
 0x157   :  { %v2023_v62 = vpop.f32.mrf.mxu0 }
 0x158   :  { %v2064_v63 = vpop.f32.mrf.mxu1  ;;  %2344 = vmatpush2.bf16.msra.mxu0 %v3994_v56  ;;  %v4052_v56 = vld [vmem:[#allocation5 + $0x7f4] ss:$24 sps:$4 sm:$0xff]   ;;  %v4057_v62 = vld [vmem:[#allocation5 + $0x7c4] ss:$24 sps:$4 sm:$0xff]  }
 0x159   :  { %2385 = vmatpush2.bf16.msra.mxu1 %v3997_v57  ;;  %v2024_v2 = vpop.f32.mrf.mxu0  ;;  %2395 = vmatprep.subr.bf16.mxu0 %v4002_v60  ;;  %v407_v57 = vrot.slane %v4406_v51, %v406_v50  ;;  %v411_v60 = vrot.slane %v4406_v51, %v410_v52 }
 0x15a   :  { %2450 = vmatprep.subr.bf16.mxu1 %v4029_v61  ;;  %v2065_v3 = vpop.f32.mrf.mxu1  ;;  %v4050_v61 = vld [vmem:[#allocation5 + $0x7f0] ss:$24 sps:$4 sm:$0xff]   ;;  %v4062_v2 = vld [vmem:[#allocation5 + $0x794] ss:$24 sps:$4 sm:$0xff]  }
 0x15b   :  { %2346 = vmatmul.mubr.bf16.vlgmr.msra.gmra.mxu0 %v4353_v18  ;;  %v4034_v18 = vld [vmem:[#allocation8 + $0x38] sm:$0xff]   ;;  %v2020_v63 = vadd.f32 %v4387_v54, %v407_v57  ;;  %v4093_v57 = vld [vmem:[#allocation8 + $0x150] sm:$0xff]  }
 0x15c   :  { %2387 = vmatmul.mubr.bf16.vlgmr.msra.gmra.mxu1 %v4357_v23  ;;  %v4397_v5 = vpop.f32.mrf.mxu1  ;;  %2396 = vmatpush1.bf16.msra.mxu0 %v4000_v0  ;;  %v4011_v23 = vld [vmem:[#allocation5 + $0x6d4] ss:$24 sps:$4 sm:$0xff]   ;;  %v2022_v0 = vadd.f32 %v4391_v58, %v411_v60 }
 0x15d   :  { %2451 = vmatpush1.bf16.msra.mxu1 %v4027_v1  ;;  %2397 = vmatprep.subr.bf16.mxu0 %v4005_v4  ;;  %v4055_v1 = vld [vmem:[#allocation5 + $0x7c0] ss:$24 sps:$4 sm:$0xff]   ;;  %v2061_v4 = vadd.f32 %v4389_v55, %v2020_v63 }
 0x15e   :  { %2468 = vmatprep.mubr.bf16.mxu1 %v4270_v31  ;;  %v4400_v9 = vpop.f32.mrf.mxu1  ;;  %3490 = vmatprep.subr.bf16.mxu1 %v4033_v6  ;;  %v4039_v31 = vld [vmem:[#allocation8 + $0x30] sm:$0xff]   ;;  %v2063_v6 = vadd.f32 %v4393_v59, %v2022_v0 }
 0x15f   :  { %2427 = vmatprep.mubr.bf16.mxu0 %v4360_v28  ;;  %v4012_v28 = vld [vmem:[#allocation5 + $0x6a0] ss:$24 sps:$4 sm:$0xff]  }
 0x160   :  { %v2146_v10 = vpop.f32.mrf.mxu1  ;;  %2398 = vmatpush1.bf16.msra.mxu0 %v4003_v7 }
 0x161   :  { %2399 = vmatprep.subr.bf16.mxu0 %v4008_v8  ;;  %v4060_v8 = vld [vmem:[#allocation5 + $0x790] ss:$24 sps:$4 sm:$0xff]  }
 0x162   :  { %v2147_v13 = vpop.f32.mrf.mxu1 }
 0x164   :  { %3431 = vmatmul.mubr.msk.bf16.vlgmr.msra.gmra.mxu1 %vm1981_vm0, %v4371_v35  ;;  %2400 = vmatpush1.bf16.msra.mxu0 %v4006_v11  ;;  %v4049_v35 = vld [vmem:[#allocation8 + $0x20] sm:$0xff]  }
 0x165   :  { %3491 = vmatpush3.bf16.msra.mxu1 %v4034_v18  ;;  %2401 = vmatprep.subr.bf16.mxu0 %v4011_v23 }
 0x166   :  { %3492 = vmatprep.subr.bf16.mxu1 %v4038_v12 }
 0x168   :  { %2402 = vmatpush1.bf16.msra.mxu0 %v4009_v14  ;;  %v4068_v14 = vld [vmem:[#allocation8 + $0xb8] sm:$0xff]  }
 0x169   :  { %3493 = vmatpush3.bf16.msra.mxu1 %v4039_v31  ;;  %2403 = vmatprep.subr.bf16.mxu0 %v4014_v15  ;;  %v4069_v15 = vld [vmem:[#allocation8 + $0xf0] sm:$0xff]  }
 0x16a   :  { %3494 = vmatprep.subr.bf16.mxu1 %v4043_v16 }
 0x16c   :  { %2404 = vmatpush1.bf16.msra.mxu0 %v4012_v28  ;;  %v4070_v28 = vld [vmem:[#allocation8 + $0xb0] sm:$0xff]  }
 0x16d   :  { %3495 = vmatpush3.bf16.msra.mxu1 %v4044_v17  ;;  %2405 = vmatprep.subr.bf16.mxu0 %v4017_v19  ;;  %v4071_v17 = vld [vmem:[#allocation8 + $0xe8] sm:$0xff]   ;;  %v4083_v19 = vld [vmem:[#allocation8 + $0x178] sm:$0xff]  }
 0x16e   :  { %3496 = vmatprep.subr.bf16.mxu1 %v4048_v20  ;;  %v4084_v20 = vld [vmem:[#allocation8 + $0x138] sm:$0xff]  }
 0x170   :  { %2406 = vmatpush1.bf16.msra.mxu0 %v4015_v21  ;;  %v4085_v21 = vld [vmem:[#allocation8 + $0x170] sm:$0xff]  }
 0x171   :  { %3497 = vmatpush3.bf16.msra.mxu1 %v4049_v35  ;;  %2407 = vmatprep.subr.bf16.mxu0 %v4020_v22  ;;  %v4086_v35 = vld [vmem:[#allocation8 + $0x130] sm:$0xff]   ;;  %v4073_v22 = vld [vmem:[#allocation8 + $0xe0] sm:$0xff]  }
 0x172   :  { %3498 = vmatprep.subr.bf16.mxu1 %v4053_v24  ;;  %v4087_v24 = vld [vmem:[#allocation8 + $0x168] sm:$0xff]  }
 0x174   :  { %2408 = vmatpush1.bf16.msra.mxu0 %v4018_v25  ;;  %v4074_v25 = vld [vmem:[#allocation8 + $0xa0] sm:$0xff]  }
 0x175   :  { %3499 = vmatpush3.bf16.msra.mxu1 %v4054_v26  ;;  %2409 = vmatprep.subr.bf16.mxu0 %v4023_v27  ;;  %v4088_v26 = vld [vmem:[#allocation8 + $0x128] sm:$0xff]   ;;  %v4075_v27 = vld [vmem:[#allocation8 + $0xd8] sm:$0xff]  }
 0x176   :  { %3500 = vmatprep.subr.bf16.mxu1 %v4058_v30  ;;  %v4089_v30 = vld [vmem:[#allocation8 + $0x160] sm:$0xff]  }
 0x178   :  { %2410 = vmatpush1.bf16.msra.mxu0 %v4021_v32  ;;  %v4076_v32 = vld [vmem:[#allocation8 + $0x98] sm:$0xff]  }
 0x179   :  { %3501 = vmatpush3.bf16.msra.mxu1 %v4059_v33  ;;  %2411 = vmatprep.subr.bf16.mxu0 %v4026_v34  ;;  %v4090_v33 = vld [vmem:[#allocation8 + $0x120] sm:$0xff]   ;;  %v4077_v34 = vld [vmem:[#allocation8 + $0xd0] sm:$0xff]  }
 0x17a   :  { %3502 = vmatprep.subr.bf16.mxu1 %v4063_v36  ;;  %v4091_v36 = vld [vmem:[#allocation8 + $0x158] sm:$0xff]  }
 0x17c   :  { %2412 = vmatpush2.bf16.msra.mxu0 %v4024_v37  ;;  %v4078_v37 = vld [vmem:[#allocation8 + $0x90] sm:$0xff]  }
 0x17d   :  { %3503 = vmatpush3.bf16.msra.mxu1 %v4064_v38  ;;  %2413 = vmatprep.subr.bf16.mxu0 %v4032_v39  ;;  %v4092_v38 = vld [vmem:[#allocation8 + $0x118] sm:$0xff]   ;;  %v4079_v39 = vld [vmem:[#allocation8 + $0xc8] sm:$0xff]  }
 0x17e   :  { %3504 = vmatprep.subr.bf16.mxu1 %v4065_v40  ;;  %v4080_v40 = vld [vmem:[#allocation8 + $0x88] sm:$0xff]  }
 0x180   :  { %2414 = vmatpush2.bf16.msra.mxu0 %v4030_v41  ;;  %v4081_v41 = vld [vmem:[#allocation8 + $0xc0] sm:$0xff]  }
 0x181   :  { %3505 = vmatpush3.bf16.msra.mxu1 %v4066_v42  ;;  %2415 = vmatprep.subr.bf16.mxu0 %v4037_v43  ;;  %v4082_v42 = vld [vmem:[#allocation8 + $0x80] sm:$0xff]   ;;  %v414_v43 = vsub.s32 2, %v4334_v45 }
 0x182   :  { %3512 = vmatprep.subr.bf16.mxu1 %v4067_v44  ;;  %v418_v44 = vsub.s32 3, %v4334_v45 }
 0x184   :  { %2416 = vmatpush2.bf16.msra.mxu0 %v4035_v46  ;;  %v415_v46 = vrot.slane %v4406_v51, %v414_v43 }
 0x185   :  { %2417 = vmatprep.subr.bf16.mxu0 %v4042_v47 }
 0x188   :  { %2418 = vmatpush2.bf16.msra.mxu0 %v4040_v48  ;;  %v419_v48 = vrot.slane %v4406_v51, %v418_v44 }
 0x189   :  { %2419 = vmatprep.subr.bf16.mxu0 %v4047_v49 }
 0x18c   :  { %2420 = vmatpush2.bf16.msra.mxu0 %v4045_v53 }
 0x18d   :  { %2421 = vmatprep.subr.bf16.mxu0 %v4052_v56 }
 0x190   :  { %2422 = vmatpush2.bf16.msra.mxu0 %v4050_v61  ;;  %v4094_v61 = vld [vmem:[#allocation8 + $0x110] sm:$0xff]  }
 0x191   :  { %2423 = vmatprep.subr.bf16.mxu0 %v4057_v62 }
 0x193   :  { %v2101_v3 = vpop.f32.mrf.mxu0 }
 0x194   :  { %v2102_v7 = vadd.f32 %v2101_v3, %v2061_v4  ;;  %2424 = vmatpush2.bf16.msra.mxu0 %v4055_v1  ;;  %v4095_v3 = vld [vmem:[#allocation8 + $0x148] sm:$0xff]  }
 0x195   :  { %v2103_v10 = vpop.f32.mrf.mxu0  ;;  %2425 = vmatprep.subr.bf16.mxu0 %v4062_v2 }
 0x196   :  { %v2143_v11 = vadd.f32 %v4397_v5, %v2102_v7  ;;  %v2104_v18 = vadd.f32 %v2103_v10, %v2063_v6 }
 0x197   :  { %v2105_v54 = vpop.f32.mrf.mxu0 }
 0x198   :  { %v2145_v58 = vadd.f32 %v4400_v9, %v2104_v18  ;;  %2426 = vmatpush2.bf16.msra.mxu0 %v4060_v8  ;;  %v2477_v23 = vmax.f32 %v2143_v11, 0.0  ;;  %v4096_v8 = vld [vmem:[#allocation8 + $0x108] sm:$0xff]  }
 0x199   :  { %v2106_v12 = vpop.f32.mrf.mxu0  ;;  %3534 = vmatprep.subr.bf16.mxu0 %v4083_v19 }
 0x19a   :  { %v2478_v13 = vmax.f32 %v2145_v58, 0.0  ;;  %v2483_v31 = vpack.c.bf16 %v2477_v23, %v2477_v23  ;;  %v4097_v12 = vld [vmem:[#allocation8 + $0x140] sm:$0xff]  }
 0x19b   :  { %2428 = vmatmul.mubr.bf16.vlgmr.msra.gmra.mxu0 %v4365_v29  ;;  %v4072_v29 = vld [vmem:[#allocation8 + $0xa8] sm:$0xff]  }
 0x19c   :  { %v4418_v55 = vpop.f32.mrf.mxu1  ;;  %v2484_v59 = vpack.c.bf16 %v2478_v13, %v2478_v13  ;;  %3535 = vmatpush3.bf16.msra.mxu0 %v4084_v20 }
 0x19d   :  { %3536 = vmatprep.subr.bf16.mxu0 %v4085_v21  ;;  %v2184_v50 = vadd.f32 %v4418_v55, %v415_v46  ;;  %v4098_v55 = vld [vmem:[#allocation8 + $0x100] sm:$0xff]  }
 0x19e   :  { %v2185_v16 = vpop.f32.mrf.mxu1  ;;  %2912 = vmatprep.mubr.bf16.mxu1 %v2484_v59 }
 0x19f   :  { %2913 = vmatmul.mubr.bf16.vlgmr.msra.gmra.mxu1 %v2483_v31  ;;  %v2186_v53 = vadd.f32 %v2185_v16, %v419_v48 }
 0x1a0   :  { %v2187_v5 = vpop.f32.mrf.mxu1  ;;  %3513 = vmatpush3.bf16.msra.mxu1 %v4068_v14  ;;  %3537 = vmatpush3.bf16.msra.mxu0 %v4086_v35 }
 0x1a1   :  { %3514 = vmatprep.subr.bf16.mxu1 %v4069_v15  ;;  %3538 = vmatprep.subr.bf16.mxu0 %v4087_v24  ;;  %v4271_v24 = vmov 0.0  }
 0x1a2   :  { %v2188_v9 = vpop.f32.mrf.mxu1 }
 0x1a4   :  { %3515 = vmatpush3.bf16.msra.mxu1 %v4070_v28  ;;  %3539 = vmatpush3.bf16.msra.mxu0 %v4088_v26  ;;  %v4101_v26 = vld [vmem:[%s4461_s5 + $0x28] sm:$0xff]  }
 0x1a5   :  { %3516 = vmatprep.subr.bf16.mxu1 %v4071_v17  ;;  %3540 = vmatprep.subr.bf16.mxu0 %v4089_v30  ;;  %v4103_v30 = vld [vmem:[%s4461_s5 + $0x18] sm:$0xff]  }
 0x1a8   :  { %3517 = vmatpush3.bf16.msra.mxu1 %v4072_v29  ;;  %3541 = vmatpush3.bf16.msra.mxu0 %v4090_v33  ;;  %v426_v33 = vsub.s32 5, %v4334_v45 }
 0x1a9   :  { %3518 = vmatprep.subr.bf16.mxu1 %v4073_v22  ;;  %3542 = vmatprep.subr.bf16.mxu0 %v4091_v36  ;;  %v4099_v22 = vld [vmem:[%s4461_s5 + $0x38] sm:$0xff]  }
 0x1aa   :  { %v427_v36 = vrot.slane %v4406_v51, %v426_v33 }
 0x1ac   :  { %3519 = vmatpush3.bf16.msra.mxu1 %v4074_v25  ;;  %3543 = vmatpush3.bf16.msra.mxu0 %v4092_v38  ;;  %v4100_v25 = vld [vmem:[%s4461_s5 + $0x30] sm:$0xff]  }
 0x1ad   :  { %3520 = vmatprep.subr.bf16.mxu1 %v4075_v27  ;;  %3544 = vmatprep.subr.bf16.mxu0 %v4093_v57  ;;  %v4102_v27 = vld [vmem:[%s4461_s5 + $0x20] sm:$0xff]  }
 0x1b0   :  { %3521 = vmatpush3.bf16.msra.mxu1 %v4076_v32  ;;  %3545 = vmatpush3.bf16.msra.mxu0 %v4094_v61  ;;  %v422_v32 = vsub.s32 4, %v4334_v45 }
 0x1b1   :  { %3522 = vmatprep.subr.bf16.mxu1 %v4077_v34  ;;  %3546 = vmatprep.subr.bf16.mxu0 %v4095_v3 }
 0x1b2   :  { %v423_v34 = vrot.slane %v4406_v51, %v422_v32 }
 0x1b4   :  { %3523 = vmatpush3.bf16.msra.mxu1 %v4078_v37  ;;  %3547 = vmatpush3.bf16.msra.mxu0 %v4096_v8 }
 0x1b5   :  { %3524 = vmatprep.subr.bf16.mxu1 %v4079_v39  ;;  %3548 = vmatprep.subr.bf16.mxu0 %v4097_v12 }
 0x1b8   :  { %3525 = vmatpush3.bf16.msra.mxu1 %v4080_v40  ;;  %3549 = vmatpush3.bf16.msra.mxu0 %v4098_v55 }
 0x1b9   :  { %3526 = vmatprep.subr.bf16.mxu1 %v4081_v41 }
 0x1bc   :  { %3527 = vmatpush3.bf16.msra.mxu1 %v4082_v42 }
 0x1bd   :  { %3565 = vmatprep.subr.bf16.mxu1 %v4271_v24 }
 0x1d3   :  { %v2224_v47 = vpop.f32.mrf.mxu0 }
 0x1d4   :  { %v2225_v60 = vadd.f32 %v2224_v47, %v2184_v50 }
 0x1d5   :  { %v2226_v49 = vpop.f32.mrf.mxu0 }
 0x1d6   :  { %v2227_v0 = vadd.f32 %v2226_v49, %v2186_v53 }
 0x1d7   :  { %v2228_v52 = vpop.f32.mrf.mxu0 }
 0x1d9   :  { %v2229_v56 = vpop.f32.mrf.mxu0 }
 0x1db   :  { %v2306_v63 = vpop.f32.mrf.mxu0 }
 0x1dc   :  { %v2265_v62 = vpop.f32.mrf.mxu1 }
 0x1dd   :  { %v2266_v1 = vadd.f32 %v2265_v62, %v2225_v60  ;;  %v2308_v4 = vpop.f32.mrf.mxu0  ;;  %v4104_v62 = vld [vmem:[%s4461_s5 + $0x10] sm:$0xff]  }
 0x1de   :  { %v2267_v2 = vpop.f32.mrf.mxu1 }
 0x1df   :  { %v2307_v6 = vadd.f32 %v2306_v63, %v2266_v1  ;;  %v2268_v7 = vadd.f32 %v2267_v2, %v2227_v0  ;;  %v2310_v10 = vpop.f32.mrf.mxu0  ;;  %v3432_v63 = vld [vmem:[#allocation10] ss:$0 sm:$0xff]  ;;  %v4105_v2 = vld [vmem:[%s4461_s5 + $0x8] sm:$0xff]  }
 0x1e0   :  { %v2269_v11 = vpop.f32.mrf.mxu1  ;;  %v4106_v10 = vld [vmem:[%s4461_s5] sm:$0xff]  }
 0x1e1   :  { %v2309_v18 = vadd.f32 %v2308_v4, %v2268_v7  ;;  %v2479_v54 = vmax.f32 %v2307_v6, 0.0  ;;  %v2311_v58 = vpop.f32.mrf.mxu0 }
 0x1e2   :  { %v2270_v23 = vpop.f32.mrf.mxu1 }
 0x1e3   :  { %v2480_v13 = vmax.f32 %v2309_v18, 0.0  ;;  %v2485_v14 = vpack.c.bf16 %v2479_v54, %v2479_v54 }
 0x1e5   :  { %v2486_v59 = vpack.c.bf16 %v2480_v13, %v2480_v13 }
 0x1e7   :  { %2952 = vmatprep.mubr.bf16.mxu1 %v2486_v59  ;;  %v3481_v59 = vld [vmem:[#allocation11] ss:$0 sm:$0xff] }
 0x1e8   :  { %2953 = vmatmul.mubr.bf16.vlgmr.msra.gmra.mxu1 %v2485_v14 }
 0x1e9   :  { %3566 = vmatpush3.bf16.msra.mxu1 %v4099_v22  ;;  %3581 = vmatprep.mubr.msk.bf16.mxu1 %vm4272_vm1, %v4271_v24 }
 0x1ea   :  { %3567 = vmatprep.subr.bf16.mxu1 %v4271_v24 }
 0x1ed   :  { %3568 = vmatpush3.bf16.msra.mxu1 %v4100_v25 }
 0x1ee   :  { %3569 = vmatprep.subr.bf16.mxu1 %v4271_v24 }
 0x1f1   :  { %3570 = vmatpush3.bf16.msra.mxu1 %v4101_v26 }
 0x1f2   :  { %3571 = vmatprep.subr.bf16.mxu1 %v4271_v24 }
 0x1f5   :  { %3572 = vmatpush3.bf16.msra.mxu1 %v4102_v27 }
 0x1f6   :  { %3573 = vmatprep.subr.bf16.mxu1 %v4271_v24 }
 0x1f9   :  { %3574 = vmatpush3.bf16.msra.mxu1 %v4103_v30 }
 0x1fa   :  { %3575 = vmatprep.subr.bf16.mxu1 %v4271_v24 }
 0x1fd   :  { %3576 = vmatpush3.bf16.msra.mxu1 %v4104_v62 }
 0x1fe   :  { %3577 = vmatprep.subr.bf16.mxu1 %v4271_v24 }
 0x201   :  { %3578 = vmatpush3.bf16.msra.mxu1 %v4105_v2 }
 0x202   :  { %3579 = vmatprep.subr.bf16.mxu1 %v4271_v24 }
 0x205   :  { %3580 = vmatpush3.bf16.msra.mxu1 %v4106_v10 }
 0x21b   :  { %v2347_v31 = vpop.f32.mrf.mxu0 }
 0x21c   :  { %v2388_v15 = vpop.f32.mrf.mxu1  ;;  %v2348_v37 = vadd.f32 %v2347_v31, %v423_v34 }
 0x21d   :  { %v2349_v16 = vpop.f32.mrf.mxu0 }
 0x21e   :  { %v2390_v5 = vpop.f32.mrf.mxu1  ;;  %v2350_v38 = vadd.f32 %v2349_v16, %v427_v36  ;;  %v2389_v39 = vadd.f32 %v2388_v15, %v2348_v37 }
 0x21f   :  { %v2351_v28 = vpop.f32.mrf.mxu0 }
 0x220   :  { %v2392_v17 = vpop.f32.mrf.mxu1  ;;  %v2391_v41 = vadd.f32 %v2390_v5, %v2350_v38 }
 0x221   :  { %v2352_v9 = vpop.f32.mrf.mxu0 }
 0x222   :  { %v2393_v19 = vpop.f32.mrf.mxu1 }
 0x224   :  { %v2470_v20 = vpop.f32.mrf.mxu1 }
 0x226   :  { %v2472_v21 = vpop.f32.mrf.mxu1 }
 0x228   :  { %v2474_v29 = vpop.f32.mrf.mxu1 }
 0x22a   :  { %v2475_v35 = vpop.f32.mrf.mxu1 }
 0x25b   :  { %v2429_v40 = vpop.f32.mrf.mxu0 }
 0x25c   :  { %v2430_v42 = vadd.f32 %v2429_v40, %v2389_v39 }
 0x25d   :  { %v2431_v43 = vpop.f32.mrf.mxu0 }
 0x25e   :  { %v2471_v44 = vadd.f32 %v2470_v20, %v2430_v42  ;;  %v2432_v46 = vadd.f32 %v2431_v43, %v2391_v41 }
 0x25f   :  { %v2433_v47 = vpop.f32.mrf.mxu0  ;;  %v3506_v48 = vpop.f32.mrf.mxu1 }
 0x260   :  { %v2473_v49 = vadd.f32 %v2472_v21, %v2432_v46  ;;  %v2481_v50 = vmax.f32 %v2471_v44, 0.0 }
 0x261   :  { %v2434_v52 = vpop.f32.mrf.mxu0  ;;  %v3507_v53 = vpop.f32.mrf.mxu1 }
 0x262   :  { %v2482_v45 = vmax.f32 %v2473_v49, 0.0  ;;  %v3508_v56 = vadd.f32 %v3507_v53, %v3506_v48  ;;  %v2487_v51 = vpack.c.bf16 %v2481_v50, %v2481_v50 }
 0x263   :  { %v3509_v57 = vpop.f32.mrf.mxu1 }
 0x264   :  { %v2488_v60 = vpack.c.bf16 %v2482_v45, %v2482_v45  ;;  %v2915_v4 = vadd.f32 %v3508_v56, %v3432_v63 }
 0x265   :  { %v3510_v61 = vpop.f32.mrf.mxu1 }
 0x266   :  { %2992 = vmatprep.mubr.bf16.mxu0 %v2488_v60 }
 0x267   :  { %2993 = vmatmul.mubr.bf16.vlgmr.msra.gmra.mxu0 %v2487_v51 }
 0x2a8   :  { %v3528_v0 = vpop.f32.mrf.mxu1 }
 0x2aa   :  { %v3529_v1 = vpop.f32.mrf.mxu1 }
 0x2ab   :  { %v3530_v3 = vadd.f32 %v3529_v1, %v3528_v0 }
 0x2ac   :  { %v3531_v6 = vpop.f32.mrf.mxu1 }
 0x2ad   :  { %v2955_v7 = vadd.f32 %v3530_v3, %v2915_v4 }
 0x2ae   :  { %v3532_v8 = vpop.f32.mrf.mxu1 }
 0x327   :  { %v3550_v11 = vpop.f32.mrf.mxu0 }
 0x329   :  { %v3551_v18 = vpop.f32.mrf.mxu0 }
 0x32a   :  { %v3552_v54 = vadd.f32 %v3551_v18, %v3550_v11 }
 0x32b   :  { %v3553_v58 = vpop.f32.mrf.mxu0 }
 0x32c   :  { %v2995_v23 = vadd.f32 %v3552_v54, %v2955_v7 }
 0x32d   :  { %v3554_v12 = vpop.f32.mrf.mxu0 }
 0x32e   :  { %v3000_v13 = vmax.f32 %v2995_v23, 0.0 }
 0x330   :  { %v3001_v55 = vpack.c.bf16 %v3000_v13, %v3000_v13 }
 0x332   :  { %3582 = vmatmul.mubr.bf16.vlgmr.msra.gmra.mxu1 %v3001_v55 }
 0x3f2   :  { %v3107_v14 = vpop.f32.mrf.mxu1 }
 0x3f3   :  { %v3108_v31 = vadd.f32 %v3481_v59, %v3107_v14 }
 0x3f4   :  { %v3583_v15 = vpop.f32.mrf.mxu1 }
 0x3f5   :  { %3114 = vst.msk [vmem:[#allocation13] sm:$0xff] %vm3113_vm2, %v3108_v31 }
 0x3f6   :  { %v3110_v16 = vpop.f32.mrf.mxu1 }
 0x3f8   :  { %v3584_v5 = vpop.f32.mrf.mxu1 }
 0x3f9   :  { %3119 = vsyncadd [#allocation4], 96  ;;  %s4273_s5 = smov [#allocation13]  }
 0x3fa   :  { %s3120_s25 = sshll.u32 %s4273_s5, 4  ;;  %s3121_s25 = int_to_ptr.vmem [resolvable:$true] %s3120_s25 }
 0x3fb   :  { %s4227_s26 = scalar_lea.vmem %s3121_s25, 32  ;;  %s4231_s27 = scalar_lea.vmem %s3121_s25, 128 }
 0x3fc   :  { %p4228_p2 = scmp.ne.s32.totalorder %s3121_s25, %s4227_s26  ;;  %p4232_p3 = scmp.lt.s32.totalorder %s3121_s25, %s3121_s25 }
 0x3fd   :  { %p4233_p4 = scmp.lt.s32.totalorder %s4231_s27, %s4227_s26 }
 0x3ff   :  { %p4234_p5 = por %p4233_p4, %p4232_p3 }
 0x401   :  { %p4235_p6 = pnand %p4234_p5, %p4228_p2 }
 0x403   :  { %4238 = shalt.err (!%p4235_p6)
}
 0x404   :  { %s4274_s28 = smov 32   ;;  %s4275_s0 = smov 2  }
 0x405   :  { %3126 = dma.vmem_to_hbm [thread:$0]  %s3121_s25, 32, %s4463_s7, [#allocation4], %s4274_s28, %s4274_s28, %s4275_s0  }
 0x406   :  { %4255 = dma.done.wait [#allocation4], 128  }
 0x407   :  { %4256 = vsyncadd [#allocation4], 4294967168 }
 0x408   :  { %3130 = vsyncpa [#allocation3], 1 }
 0x409   :  { %3131 = vsyncpa [#allocation6], 1 }
 0x40a   :  { %3132 = vsyncpa [#allocation9], 1 }
 0x40b   :  { %3133 = vsyncpa [#allocation12], 1 }
 0x40c   :  { %3134 = vsyncpa [#allocation4], 1 }

</bundles_post_ra>
